<compile_context>
chip_gen: v6e
topology: v6e:2x2x1
jax: 0.10.0
libtpu: 0.0.40
codegen_flags: <defaults>
</compile_context>

<pallas_src>
import jax
import jax.numpy as jnp
from jax.experimental import pallas as pl
from jax.experimental.pallas import tpu as pltpu


def mlp_kernel(xT_ref, w1_ref, b1_ref, w2_ref, b2_ref, w3t_ref, b3_ref, o_ref):
    # Everything is lane-dense: activations are (features, batch_tile).
    xT = xT_ref[...]                                  # (2, TB) f32
    w1 = w1_ref[...]                                  # (64, 2)  PyTorch (out, in)

    # fc1 (K = 2): two broadcast FMAs on the VPU instead of a depth-2 MXU pass.
    # Kept in f32 so the elementwise path is native on v5e as well.
    h = (w1[:, 0:1] * xT[0:1, :]
         + w1[:, 1:2] * xT[1:2, :]
         + b1_ref[...])                               # (64, TB)
    h = jnp.maximum(h, 0.0)

    # fc2 (64 x 64): the only real matmul -> MXU, bf16 operands (single MXU
    # pass instead of multi-pass f32 emulation), f32 accumulation.
    h = jnp.dot(w2_ref[...],                          # already bf16 (64, 64)
                h.astype(jnp.bfloat16),
                preferred_element_type=jnp.float32) + b2_ref[...]
    h = jnp.maximum(h, 0.0)                           # (64, TB) f32

    # fc3 (only 2 output rows): per-row weighted reduction on VPU/XLU.
    # (Deliberately NOT moved to the MXU -- it would re-stream the (64, TB)
    # moving operand for only 2 output rows.)
    w3t = w3t_ref[...]                                # (64, 2)  pre-transposed
    o0 = jnp.sum(h * w3t[:, 0:1], axis=0, keepdims=True) + b3_ref[0:1, :]
    o1 = jnp.sum(h * w3t[:, 1:2], axis=0, keepdims=True) + b3_ref[1:2, :]

    # Single full-block store: one unmasked vst sequence instead of two
    # sublane-masked row writes.
    o_ref[...] = jnp.concatenate([o0, o1], axis=0).astype(o_ref.dtype)


def _pick_tile(n, tb_req):
    """Batch tile in lanes: multiple of 128, <= padded batch, and (for large
    batches) small enough that the parallel grid axis has >= 4 steps (v7x has
    2 TensorCores per chip)."""
    tb = max(128, (int(tb_req) // 128) * 128)
    n_pad128 = pl.cdiv(n, 128) * 128
    tb = min(tb, n_pad128)
    quarter = (n_pad128 // 4) // 128 * 128
    if quarter >= 1024:          # only cap when the resulting tile stays large
        tb = min(tb, quarter)
    return tb


def net_class_forward(x, params, *, tb=4096):
    """x: (N, 2) float32.  params are in PyTorch layout:
       w1 (64,2), b1 (64,), w2 (64,64), b2 (64,), w3 (2,64), b3 (2,)."""
    n, in_dim = x.shape
    h_dim = params["w1"].shape[0]      # 64
    out_dim = params["w3"].shape[0]    # 2
    assert in_dim == 2, "kernel fc1 hard-codes the 2-feature input of net_class"

    tb = _pick_tile(n, tb)
    n_pad = pl.cdiv(n, tb) * tb
    grid = (n_pad // tb,)

    # Lane-dense layout: batch -> last (lane) axis, zero-padded to n_pad.
    xT = x.T
    if n_pad != n:
        xT = jnp.pad(xT, ((0, 0), (0, n_pad - n)))

    w1 = params["w1"]                                    # (64, 2)  f32
    b1 = params["b1"].reshape(h_dim, 1)                  # (64, 1)
    w2 = params["w2"].astype(jnp.bfloat16)               # (64, 64) bf16 for MXU
    b2 = params["b2"].reshape(h_dim, 1)                  # (64, 1)  f32
    w3t = params["w3"].T                                 # (64, 2)  f32
    b3 = params["b3"].reshape(out_dim, 1)                # (2, 1)

    # Weights/biases: constant block index -> fetched once, VMEM-resident.
    const = lambda arr: pl.BlockSpec(arr.shape, lambda i: (0, 0))

    flops = 2 * n_pad * (in_dim * h_dim + h_dim * h_dim + h_dim * out_dim)
    bytes_accessed = (4 * (in_dim * n_pad + out_dim * n_pad
                           + w1.size + b1.size + b2.size + w3t.size + b3.size)
                      + 2 * w2.size)

    outT = pl.pallas_call(
        mlp_kernel,
        out_shape=jax.ShapeDtypeStruct((out_dim, n_pad), jnp.float32),
        grid=grid,
        in_specs=[
            pl.BlockSpec((in_dim, tb), lambda i: (0, i)),   # x tile per step
            const(w1), const(b1),
            const(w2), const(b2),
            const(w3t), const(b3),
        ],
        out_specs=pl.BlockSpec((out_dim, tb), lambda i: (0, i)),
        compiler_params=pltpu.CompilerParams(
            dimension_semantics=("parallel",),     # shard batch tiles across TCs (v7x)
            vmem_limit_bytes=32 * 1024 * 1024,     # safe on v5e/v6e/v7x; working set is tiny
        ),
        cost_estimate=pl.CostEstimate(
            flops=int(flops),
            transcendentals=0,
            bytes_accessed=int(bytes_accessed),
        ),
    )(xT, w1, b1, w2, b2, w3t, b3)

    # Strip padding and return (N, 2) to match the PyTorch module.
    return outT[:, :n].T


def init_params(key):
    """Deterministic init mimicking nn.Linear defaults, in PyTorch (out, in) layout."""
    dims = [(2, 64), (64, 64), (64, 2)]
    params = {}
    for i, (fan_in, fan_out) in enumerate(dims, start=1):
        key, kw, kb = jax.random.split(key, 3)
        bound = 1.0 / jnp.sqrt(float(fan_in))
        params[f"w{i}"] = jax.random.uniform(
            kw, (fan_out, fan_in), jnp.float32, -bound, bound)
        params[f"b{i}"] = jax.random.uniform(
            kb, (fan_out,), jnp.float32, -bound, bound)
    return params


def reference_forward_f32(x, params):
    h = jnp.maximum(x @ params["w1"].T + params["b1"], 0.0)
    h = jnp.maximum(h @ params["w2"].T + params["b2"], 0.0)
    return h @ params["w3"].T + params["b3"]


def reference_forward_bf16_fc2(x, params):
    # Matches the kernel's numerics: f32 fc1/fc3, bf16 operands for fc2 with
    # f32 accumulation.
    h = jnp.maximum(x @ params["w1"].T + params["b1"], 0.0)
    h = jnp.dot(h.astype(jnp.bfloat16), params["w2"].T.astype(jnp.bfloat16),
                preferred_element_type=jnp.float32) + params["b2"]
    h = jnp.maximum(h, 0.0)
    return h @ params["w3"].T + params["b3"]


if __name__ == "__main__":
    key = jax.random.PRNGKey(0)
    key, kx = jax.random.split(key)
    # Batch of 2-D coordinates; non-multiple of 128 to exercise padding.
    n = 1000
    x = jax.random.normal(kx, (n, 2), jnp.float32)
    params = init_params(jax.random.PRNGKey(0))

    out = jax.block_until_ready(net_class_forward(x, params))
    assert out.shape == (n, 2)

    ref_bf = reference_forward_bf16_fc2(x, params)
    ref_f32 = reference_forward_f32(x, params)

    # Tight check against a numerics-matched (bf16 fc2) reference.
    err_bf = float(jnp.max(jnp.abs(out - ref_bf)))
    assert jnp.allclose(out, ref_bf, atol=1e-3, rtol=1e-3), err_bf
    # Loose sanity check against the full-f32 PyTorch-equivalent reference
    # (bf16 MXU operands change low-order bits).
    err_f32 = float(jnp.max(jnp.abs(out - ref_f32)))
    assert jnp.allclose(out, ref_f32, atol=5e-2, rtol=5e-2), err_f32

    # Also exercise a multi-step batch grid (pipelined tiles + padding).
    out2 = jax.block_until_ready(net_class_forward(x, params, tb=256))
    err2 = float(jnp.max(jnp.abs(out2 - ref_bf)))
    assert jnp.allclose(out2, ref_bf, atol=1e-3, rtol=1e-3), err2

    print("KERNEL_OK")
</pallas_src>

<mosaic_0001>
module attributes {stable_mosaic.version = 11 : i64} {
  func.func @mlp_kernel(%arg0: i32, %arg1: memref<2x1024xf32, #tpu.memory_space<vmem>>, %arg2: memref<64x2xf32, #tpu.memory_space<vmem>>, %arg3: memref<64x1xf32, #tpu.memory_space<vmem>>, %arg4: memref<64x64xbf16, #tpu.memory_space<vmem>>, %arg5: memref<64x1xf32, #tpu.memory_space<vmem>>, %arg6: memref<64x2xf32, #tpu.memory_space<vmem>>, %arg7: memref<2x1xf32, #tpu.memory_space<vmem>>, %arg8: memref<2x1024xf32, #tpu.memory_space<vmem>>) attributes {dimension_semantics = [#tpu.dimension_semantics<parallel>], iteration_bounds = array<i64: 1>, scalar_prefetch = 0 : i64, scratch_operands = 0 : i64, tpu.core_type = #tpu.core_type<tc>, window_params = [{transform_indices = @transform_0, window_bounds = array<i64: 2, 1024>}, {pipeline_mode = #tpu.pipeline_mode<synchronous>, transform_indices = @transform_1, window_bounds = array<i64: 64, 2>}, {pipeline_mode = #tpu.pipeline_mode<synchronous>, transform_indices = @transform_2, window_bounds = array<i64: 64, 1>}, {pipeline_mode = #tpu.pipeline_mode<synchronous>, transform_indices = @transform_3, window_bounds = array<i64: 64, 64>}, {pipeline_mode = #tpu.pipeline_mode<synchronous>, transform_indices = @transform_4, window_bounds = array<i64: 64, 1>}, {pipeline_mode = #tpu.pipeline_mode<synchronous>, transform_indices = @transform_5, window_bounds = array<i64: 64, 2>}, {pipeline_mode = #tpu.pipeline_mode<synchronous>, transform_indices = @transform_6, window_bounds = array<i64: 2, 1>}, {transform_indices = @transform_7, window_bounds = array<i64: 2, 1024>}]} {
    %c0 = arith.constant 0 : index
    %c0_0 = arith.constant 0 : index
    %0 = vector.load %arg1[%c0, %c0_0] : memref<2x1024xf32, #tpu.memory_space<vmem>>, vector<2x1024xf32>
    %c0_1 = arith.constant 0 : index
    %c0_2 = arith.constant 0 : index
    %1 = vector.load %arg2[%c0_1, %c0_2] : memref<64x2xf32, #tpu.memory_space<vmem>>, vector<64x2xf32>
    %2 = vector.extract_strided_slice %1 {offsets = [0, 0], sizes = [64, 1], strides = [1, 1]} : vector<64x2xf32> to vector<64x1xf32>
    %3 = vector.extract_strided_slice %0 {offsets = [0, 0], sizes = [1, 1024], strides = [1, 1]} : vector<2x1024xf32> to vector<1x1024xf32>
    %4 = vector.broadcast %2 : vector<64x1xf32> to vector<64x1024xf32>
    %5 = vector.broadcast %3 : vector<1x1024xf32> to vector<64x1024xf32>
    %6 = arith.mulf %4, %5 : vector<64x1024xf32>
    %7 = vector.extract_strided_slice %1 {offsets = [0, 1], sizes = [64, 1], strides = [1, 1]} : vector<64x2xf32> to vector<64x1xf32>
    %8 = vector.extract_strided_slice %0 {offsets = [1, 0], sizes = [1, 1024], strides = [1, 1]} : vector<2x1024xf32> to vector<1x1024xf32>
    %9 = vector.broadcast %7 : vector<64x1xf32> to vector<64x1024xf32>
    %10 = vector.broadcast %8 : vector<1x1024xf32> to vector<64x1024xf32>
    %11 = arith.mulf %9, %10 : vector<64x1024xf32>
    %12 = arith.addf %6, %11 : vector<64x1024xf32>
    %c0_3 = arith.constant 0 : index
    %c0_4 = arith.constant 0 : index
    %13 = vector.load %arg3[%c0_3, %c0_4] : memref<64x1xf32, #tpu.memory_space<vmem>>, vector<64x1xf32>
    %14 = vector.broadcast %13 : vector<64x1xf32> to vector<64x1024xf32>
    %15 = arith.addf %12, %14 : vector<64x1024xf32>
    %cst = arith.constant 0.000000e+00 : f32
    %16 = vector.broadcast %cst : f32 to vector<64x1024xf32>
    %17 = arith.maximumf %15, %16 : vector<64x1024xf32>
    %c0_5 = arith.constant 0 : index
    %c0_6 = arith.constant 0 : index
    %18 = vector.load %arg4[%c0_5, %c0_6] : memref<64x64xbf16, #tpu.memory_space<vmem>>, vector<64x64xbf16>
    %19 = arith.truncf %17 : vector<64x1024xf32> to vector<64x1024xbf16>
    %cst_7 = arith.constant dense<0.000000e+00> : vector<64x1024xf32>
    %20 = tpu.matmul %18, %19, %cst_7 {dimension_numbers = #tpu.dot_dimension_numbers<[1], [0], [0], [1], [0, 0, 1, 1], [], []>} : vector<64x64xbf16>, vector<64x1024xbf16>, vector<64x1024xf32> -> vector<64x1024xf32>
    %c0_8 = arith.constant 0 : index
    %c0_9 = arith.constant 0 : index
    %21 = vector.load %arg5[%c0_8, %c0_9] : memref<64x1xf32, #tpu.memory_space<vmem>>, vector<64x1xf32>
    %22 = vector.broadcast %21 : vector<64x1xf32> to vector<64x1024xf32>
    %23 = arith.addf %20, %22 : vector<64x1024xf32>
    %cst_10 = arith.constant 0.000000e+00 : f32
    %24 = vector.broadcast %cst_10 : f32 to vector<64x1024xf32>
    %25 = arith.maximumf %23, %24 : vector<64x1024xf32>
    %c0_11 = arith.constant 0 : index
    %c0_12 = arith.constant 0 : index
    %26 = vector.load %arg6[%c0_11, %c0_12] : memref<64x2xf32, #tpu.memory_space<vmem>>, vector<64x2xf32>
    %27 = vector.extract_strided_slice %26 {offsets = [0, 0], sizes = [64, 1], strides = [1, 1]} : vector<64x2xf32> to vector<64x1xf32>
    %28 = vector.broadcast %27 : vector<64x1xf32> to vector<64x1024xf32>
    %29 = arith.mulf %25, %28 : vector<64x1024xf32>
    %cst_13 = arith.constant dense<0.000000e+00> : vector<1024xf32>
    %30 = vector.multi_reduction <add>, %29, %cst_13 [0] : vector<64x1024xf32> to vector<1024xf32>
    %31 = vector.shape_cast %30 : vector<1024xf32> to vector<1x1024xf32>
    %c0_14 = arith.constant 0 : index
    %c0_15 = arith.constant 0 : index
    %32 = vector.load %arg7[%c0_14, %c0_15] : memref<2x1xf32, #tpu.memory_space<vmem>>, vector<1x1xf32>
    %33 = vector.broadcast %32 : vector<1x1xf32> to vector<1x1024xf32>
    %34 = arith.addf %31, %33 : vector<1x1024xf32>
    %35 = vector.extract_strided_slice %26 {offsets = [0, 1], sizes = [64, 1], strides = [1, 1]} : vector<64x2xf32> to vector<64x1xf32>
    %36 = vector.broadcast %35 : vector<64x1xf32> to vector<64x1024xf32>
    %37 = arith.mulf %25, %36 : vector<64x1024xf32>
    %cst_16 = arith.constant dense<0.000000e+00> : vector<1024xf32>
    %38 = vector.multi_reduction <add>, %37, %cst_16 [0] : vector<64x1024xf32> to vector<1024xf32>
    %39 = vector.shape_cast %38 : vector<1024xf32> to vector<1x1024xf32>
    %c1 = arith.constant 1 : index
    %c0_17 = arith.constant 0 : index
    %40 = vector.load %arg7[%c1, %c0_17] : memref<2x1xf32, #tpu.memory_space<vmem>>, vector<1x1xf32>
    %41 = vector.broadcast %40 : vector<1x1xf32> to vector<1x1024xf32>
    %42 = arith.addf %39, %41 : vector<1x1024xf32>
    %43 = tpu.concatenate %34, %42 in 0 : vector<1x1024xf32>, vector<1x1024xf32> -> vector<2x1024xf32>
    %c0_18 = arith.constant 0 : index
    %c0_19 = arith.constant 0 : index
    %44 = vector.load %arg8[%c0_18, %c0_19] : memref<2x1024xf32, #tpu.memory_space<vmem>>, vector<2x1024xf32>
    tpu.vector_store %arg8[%c0_18, %c0_19], %43 {strides = array<i32>} : memref<2x1024xf32, #tpu.memory_space<vmem>>, vector<2x1024xf32>,
    return
  }
  func.func @transform_0(%arg0: i32) -> (i32, i32) {
    %c0_i32 = arith.constant 0 : i32
    %c0_i32_0 = arith.constant 0 : i32
    return %c0_i32, %arg0 : i32, i32
  }
  func.func @transform_1(%arg0: i32) -> (i32, i32) {
    %c0_i32 = arith.constant 0 : i32
    %c0_i32_0 = arith.constant 0 : i32
    %c0_i32_1 = arith.constant 0 : i32
    return %c0_i32, %c0_i32_0 : i32, i32
  }
  func.func @transform_2(%arg0: i32) -> (i32, i32) {
    %c0_i32 = arith.constant 0 : i32
    %c0_i32_0 = arith.constant 0 : i32
    %c0_i32_1 = arith.constant 0 : i32
    return %c0_i32, %c0_i32_0 : i32, i32
  }
  func.func @transform_3(%arg0: i32) -> (i32, i32) {
    %c0_i32 = arith.constant 0 : i32
    %c0_i32_0 = arith.constant 0 : i32
    %c0_i32_1 = arith.constant 0 : i32
    return %c0_i32, %c0_i32_0 : i32, i32
  }
  func.func @transform_4(%arg0: i32) -> (i32, i32) {
    %c0_i32 = arith.constant 0 : i32
    %c0_i32_0 = arith.constant 0 : i32
    %c0_i32_1 = arith.constant 0 : i32
    return %c0_i32, %c0_i32_0 : i32, i32
  }
  func.func @transform_5(%arg0: i32) -> (i32, i32) {
    %c0_i32 = arith.constant 0 : i32
    %c0_i32_0 = arith.constant 0 : i32
    %c0_i32_1 = arith.constant 0 : i32
    return %c0_i32, %c0_i32_0 : i32, i32
  }
  func.func @transform_6(%arg0: i32) -> (i32, i32) {
    %c0_i32 = arith.constant 0 : i32
    %c0_i32_0 = arith.constant 0 : i32
    %c0_i32_1 = arith.constant 0 : i32
    return %c0_i32, %c0_i32_0 : i32, i32
  }
  func.func @transform_7(%arg0: i32) -> (i32, i32) {
    %c0_i32 = arith.constant 0 : i32
    %c0_i32_0 = arith.constant 0 : i32
    return %c0_i32, %arg0 : i32, i32
  }
}

</mosaic_0001>

<bundles_post_ra>
// kernel: tpu_custom_call.1
= control target key start
LH: loop header
LB: loop body
LE: loop exit
PB: predicated region body
PF: predicated region fallthrough
CT: control target
= control target key end

     0   :  { %v2939_v2 = vmov 1   ;;  %v2941_v5 = vmov 0   ;;  %s2931_s0 = inlined_call_operand.vmem [shape: f32[2,1024], index: 0, kind: input, shape index: {}]   ;;  %s2932_s1 = inlined_call_operand.vmem [shape: f32[64,2], index: 1, kind: input, shape index: {}]   ;;  %s2933_s2 = inlined_call_operand.vmem [shape: f32[64,1], index: 2, kind: input, shape index: {}]   ;;  %s2934_s3 = inlined_call_operand.vmem [shape: bf16[64,64], index: 3, kind: input, shape index: {}]   ;;  %s2935_s4 = inlined_call_operand.vmem [shape: f32[64,1], index: 4, kind: input, shape index: {}]   ;;  %s2936_s5 = inlined_call_operand.vmem [shape: f32[64,2], index: 5, kind: input, shape index: {}]   ;;  %s2937_s6 = inlined_call_operand.vmem [shape: f32[2,1], index: 6, kind: input, shape index: {}]   ;;  %s2938_s7 = inlined_call_operand.hbm [shape: f32[2,1024], index: 7, kind: output, shape index: {}]  }
   0x1   :  { %v36_v0 = vld [vmem:[%s2932_s1 + $0x30] sm:$0xff]  ;;  %v34_v1 = vld [vmem:[%s2932_s1 + $0x20] sm:$0xff]  ;;  %1664 = vset.pattern.permute.xlu0 %v2939_v2  ;;  %1662 = vset.pattern.permute.xlu1 %v2939_v2  ;;  %v37_v3 = vld [vmem:[%s2932_s1 + $0x38] sm:$0xff] }
   0x2   :  { %241 = vperm.xlu1 %1662, %v36_v0   ;;  %233 = vperm.xlu0 %1664, %v34_v1   ;;  %v32_v4 = vld [vmem:[%s2932_s1 + $0x10] sm:$0xff]  ;;  %v30_v6 = vld [vmem:[%s2932_s1] sm:$0xff]  ;;  %v35_v7 = vld [vmem:[%s2932_s1 + $0x28] sm:$0xff] }
   0x3   :  { %777 = vmatprep.mubr.bf16.mxu0 %v2941_v5  ;;  %850 = vmatprep.mubr.bf16.mxu1 %v2941_v5 }
   0x6   :  { %245 = vperm.xlu1 %1662, %v37_v3   ;;  %225 = vperm.xlu0 %1664, %v32_v4  }
   0xa   :  { %1663 = vset.pattern.permute.xlu1 %v2941_v5  ;;  %217 = vperm.xlu0 %1664, %v30_v6  }
   0xb   :  { %65 = vperm.xlu1 %1663, %v35_v7  }
   0xc   :  { %12 = vsyncpa [#allocation3], 0  ;;  %v454_v8 = vld [vmem:[%s2933_s2 + $0x30] sm:$0xff]  ;;  %v455_v9 = vld [vmem:[%s2933_s2 + $0x38] sm:$0xff]  ;;  %v80_v25 = vlaneseq  ;;  %vm732_vm0 = vcmask 523264   ;;  %vm1569_vm1 = vcmask 1040384  }
   0xd   :  { %v33_v10 = vld [vmem:[%s2932_s1 + $0x18] sm:$0xff]  ;;  %v453_v11 = vld [vmem:[%s2933_s2 + $0x28] sm:$0xff]  ;;  %v452_v13 = vld [vmem:[%s2933_s2 + $0x20] sm:$0xff] }
   0xe   :  { %1669 = vset.pattern.permute.xlu0 %v2941_v5  ;;  %v451_v12 = vld [vmem:[%s2933_s2 + $0x18] sm:$0xff]  ;;  %v664_v14 = vld [vmem:[%s2935_s4] sm:$0xff]  ;;  %v666_v15 = vld [vmem:[%s2935_s4 + $0x10] sm:$0xff]  ;;  %v1838_v26 = vshrl.u32 %v80_v25, 7 }
   0xf   :  { %1665 = vset.pattern.permute.xlu1 %v2939_v2  ;;  %70 = vperm.xlu0 %1669, %v36_v0   ;;  %v1101_v16 = vld [vmem:[%s2936_s5] sm:$0xff]  ;;  %v31_v17 = vld [vmem:[%s2932_s1 + $0x8] sm:$0xff]  ;;  %v450_v20 = vld [vmem:[%s2933_s2 + $0x10] sm:$0xff] }
  0x10   :  { %237 = vperm.xlu1 %1665, %v35_v7   ;;  %v669_v18 = vld [vmem:[%s2935_s4 + $0x28] sm:$0xff]  ;;  %v1817_v19 = vld [vmem:[%s2936_s5 + $0x20] sm:$0xff]  ;;  %v667_v24 = vld [vmem:[%s2935_s4 + $0x18] sm:$0xff]  ;;  %2985 = vst [vmem:[#allocation5_spill] sm:$0xff] %v1838_v26  ;;  %v254_v27 = vsub.s32 3, %v1838_v26  ;;  %v262_v28 = vsub.s32 7, %v1838_v26 }
  0x11   :  { %v448_v21 = vld [vmem:[%s2933_s2] sm:$0xff]  ;;  %v449_v22 = vld [vmem:[%s2933_s2 + $0x8] sm:$0xff]  ;;  %v86_v30 = vsub.s32 2, %v1838_v26  ;;  %v250_v31 = vsub.s32 1, %v1838_v26  ;;  %v94_v32 = vsub.s32 6, %v1838_v26  ;;  %v258_v33 = vsub.s32 5, %v1838_v26 }
  0x12   :  { %v665_v23 = vld [vmem:[%s2935_s4 + $0x8] sm:$0xff]  ;;  %v28_v29 = vld [vmem:[%s2931_s0] sm:$0xff]  ;;  %v82_v34 = vsub.s32 0, %v1838_v26  ;;  %v90_v35 = vsub.s32 4, %v1838_v26 }
  0x13   :  { %75 = vperm.xlu0 %1669, %v37_v3   ;;  %v29_v36 = vld [vmem:[%s2931_s0 + $0x8] sm:$0xff]  ;;  %v255_v37 = vrot.slane %v28_v29, %v254_v27  ;;  %v263_v38 = vrot.slane %v28_v29, %v262_v28  ;;  %v87_v39 = vrot.slane %v28_v29, %v86_v30  ;;  %v95_v40 = vrot.slane %v28_v29, %v94_v32  ;;  %v668_v56 = vld [vmem:[%s2935_s4 + $0x20] sm:$0xff] }
  0x14   :  { %1666 = vset.pattern.permute.xlu1 %v2941_v5  ;;  %v251_v41 = vrot.slane %v28_v29, %v250_v31  ;;  %v259_v42 = vrot.slane %v28_v29, %v258_v33  ;;  %v1102_v43 = vld [vmem:[%s2936_s5 + $0x8] sm:$0xff]  ;;  %v83_v44 = vrot.slane %v28_v29, %v82_v34  ;;  %v91_v45 = vrot.slane %v28_v29, %v90_v35 }
  0x15   :  { %488 = vperm.xlu1 %1666, %v454_v8   ;;  %v271_v46 = vrot.slane %v29_v36, %v254_v27  ;;  %v279_v47 = vrot.slane %v29_v36, %v262_v28  ;;  %v275_v48 = vrot.slane %v29_v36, %v258_v33  ;;  %v103_v49 = vrot.slane %v29_v36, %v86_v30 }
  0x16   :  { %v111_v50 = vrot.slane %v29_v36, %v94_v32  ;;  %v267_v51 = vrot.slane %v29_v36, %v250_v31  ;;  %v1857_v52 = vrot.slane %v255_v37, %v250_v31  ;;  %v1859_v53 = vrot.slane %v263_v38, %v250_v31  ;;  %v1103_v38 = vld [vmem:[%s2936_s5 + $0x10] sm:$0xff] }
  0x17   :  { %60 = vperm.xlu0 %1669, %v34_v1   ;;  %v107_v54 = vrot.slane %v29_v36, %v90_v35  ;;  %v99_v55 = vrot.slane %v29_v36, %v82_v34  ;;  %v1864_v57 = vrot.slane %v87_v39, %v82_v34  ;;  %v1866_v58 = vrot.slane %v95_v40, %v82_v34 }
  0x18   :  { %v1868_v59 = vrot.slane %v251_v41, %v250_v31  ;;  %v1870_v60 = vrot.slane %v259_v42, %v250_v31  ;;  %v1872_v63 = vrot.slane %v83_v44, %v82_v34  ;;  %v1874_v0 = vrot.slane %v91_v45, %v82_v34 }
  0x19   :  { %50 = vperm.xlu1 %1666, %v32_v4   ;;  %v1876_v1 = vrot.slane %v271_v46, %v250_v31  ;;  %v1878_v3 = vrot.slane %v279_v47, %v250_v31  ;;  %v1881_v4 = vrot.slane %v103_v49, %v82_v34  ;;  %v1885_v7 = vrot.slane %v267_v51, %v250_v31  ;;  %v1999_v49 = vld [vmem:[%s2936_s5 + $0x30] sm:$0xff] }
  0x1a   :  { %v1887_v8 = vrot.slane %v275_v48, %v250_v31 }
  0x1b   :  { %493 = vperm.xlu0 %1669, %v455_v9   ;;  %2986 = vst [vmem:[#allocation6_spill] sm:$0xff] %v1876_v1  ;;  %2987 = vst [vmem:[#allocation7_spill] sm:$0xff] %v1878_v3 }
  0x1c   :  { %2988 = vst [vmem:[#allocation8_spill] sm:$0xff] %v1881_v4  ;;  %2990 = vst [vmem:[#allocation10_spill] sm:$0xff] %v1885_v7 }
  0x1d   :  { %55 = vperm.xlu1 %1666, %v33_v10   ;;  %2991 = vst [vmem:[#allocation11_spill] sm:$0xff] %v1887_v8 }
  0x1f   :  { %483 = vperm.xlu0 %1669, %v453_v11   ;;  %v1895_v11 = vrot.slane %v99_v55, %v82_v34 }
  0x21   :  { %1667 = vset.pattern.permute.xlu1 %v2939_v2 }
  0x22   :  { %229 = vperm.xlu1 %1667, %v33_v10  }
  0x23   :  { %473 = vperm.xlu0 %1669, %v451_v12   ;;  %v1897_v12 = vrot.slane %v107_v54, %v82_v34 }
  0x25   :  { %2992 = vst [vmem:[#allocation12_spill] sm:$0xff] %v1897_v12 }
  0x26   :  { %1668 = vset.pattern.permute.xlu1 %v2941_v5 }
  0x27   :  { %478 = vperm.xlu1 %1668, %v452_v13   ;;  %674 = vperm.xlu0 %1669, %v664_v14  }
  0x2b   :  { %684 = vperm.xlu0 %1669, %v666_v15   ;;  %40 = vperm.xlu1 %1668, %v30_v6   ;;  %v1883_v6 = vrot.slane %v111_v50, %v82_v34 }
  0x2d   :  { %2989 = vst [vmem:[#allocation9_spill] sm:$0xff] %v1883_v6 }
  0x2f   :  { %1111 = vperm.xlu0 %1669, %v1101_v16   ;;  %45 = vperm.xlu1 %1668, %v31_v17  }
  0x33   :  { %699 = vperm.xlu0 %1669, %v669_v18   ;;  %1670 = vset.pattern.permute.xlu1 %v2939_v2 }
  0x34   :  { %221 = vperm.xlu1 %1670, %v31_v17   ;;  %v1914_v17 = vld [vmem:[%s2936_s5 + $0x18] sm:$0xff] }
  0x37   :  { %1131 = vperm.xlu0 %1669, %v1817_v19  }
  0x38   :  { %1671 = vset.pattern.permute.xlu1 %v2941_v5 }
  0x39   :  { %468 = vperm.xlu1 %1671, %v450_v20  }
  0x3b   :  { %1676 = vset.pattern.permute.xlu0 %v2939_v2 }
  0x3c   :  { %1332 = vperm.xlu0 %1676, %v1101_v16  }
  0x3d   :  { %458 = vperm.xlu1 %1671, %v448_v21  }
  0x40   :  { %1344 = vperm.xlu0 %1676, %v1914_v17  }
  0x41   :  { %463 = vperm.xlu1 %1671, %v449_v22  }
  0x44   :  { %1348 = vperm.xlu0 %1676, %v1817_v19  }
  0x45   :  { %679 = vperm.xlu1 %1671, %v665_v23  }
  0x48   :  { %1356 = vperm.xlu0 %1676, %v1999_v49  }
  0x49   :  { %689 = vperm.xlu1 %1671, %v667_v24  }
  0x4d   :  { %1672 = vset.pattern.permute.xlu1 %v2939_v2 }
  0x4e   :  { %1336 = vperm.xlu1 %1672, %v1102_v43  }
  0x52   :  { %1673 = vset.pattern.permute.xlu1 %v2941_v5 }
  0x53   :  { %694 = vperm.xlu1 %1673, %v668_v56  }
  0x57   :  { %1116 = vperm.xlu1 %1673, %v1102_v43  }
  0x5b   :  { %1674 = vset.pattern.permute.xlu1 %v2939_v2 }
  0x5c   :  { %1340 = vperm.xlu1 %1674, %v1103_v38  }
  0x7d   :  { %v242_v61 = vpop.permute.xlu1 %241  ;;  %v234_v62 = vpop.permute.xlu0 %233 }
  0x7e   :  { %v1890_v9 = vmul.f32 %v1857_v52, %v242_v61  ;;  %v1893_v10 = vmul.f32 %v1859_v53, %v242_v61  ;;  %v1900_v13 = vmul.f32 %v1868_v59, %v242_v61  ;;  %v1903_v14 = vmul.f32 %v1870_v60, %v242_v61 }
  0x7f   :  { %v1906_v15 = vmul.f32 %v1857_v52, %v234_v62  ;;  %v1909_v16 = vmul.f32 %v1859_v53, %v234_v62  ;;  %v1917_v21 = vmul.f32 %v1868_v59, %v234_v62  ;;  %v1920_v22 = vmul.f32 %v1870_v60, %v234_v62 }
  0x80   :  { %v1923_v23 = vmul.f32 %v1876_v1, %v242_v61  ;;  %v1926_v24 = vmul.f32 %v1878_v3, %v242_v61  ;;  %v1930_v25 = vmul.f32 %v1885_v7, %v242_v61  ;;  %v1933_v27 = vmul.f32 %v1887_v8, %v242_v61 }
  0x81   :  { %v246_v18 = vpop.permute.xlu1 %245  ;;  %v226_v20 = vpop.permute.xlu0 %225  ;;  %v1936_v28 = vmul.f32 %v1876_v1, %v234_v62  ;;  %v1939_v29 = vmul.f32 %v1878_v3, %v234_v62  ;;  %v1948_v32 = vmul.f32 %v1885_v7, %v234_v62  ;;  %v1951_v33 = vmul.f32 %v1887_v8, %v234_v62 }
  0x82   :  { %2993 = vst [vmem:[#allocation13_spill] sm:$0xff] %v1930_v25  ;;  %2994 = vst [vmem:[#allocation14_spill] sm:$0xff] %v1933_v27  ;;  %v1942_v30 = vmul.f32 %v1857_v52, %v246_v18  ;;  %v1945_v31 = vmul.f32 %v1859_v53, %v246_v18  ;;  %v1954_v34 = vmul.f32 %v1868_v59, %v246_v18 }
  0x83   :  { %2995 = vst [vmem:[#allocation15_spill] sm:$0xff] %v1936_v28  ;;  %2996 = vst [vmem:[#allocation16_spill] sm:$0xff] %v1939_v29  ;;  %v1957_v35 = vmul.f32 %v1870_v60, %v246_v18  ;;  %v1960_v36 = vmul.f32 %v1857_v52, %v226_v20  ;;  %v1963_v37 = vmul.f32 %v1859_v53, %v226_v20 }
  0x84   :  { %2997 = vst [vmem:[#allocation17_spill] sm:$0xff] %v1948_v32  ;;  %2998 = vst [vmem:[#allocation18_spill] sm:$0xff] %v1951_v33  ;;  %v1971_v40 = vmul.f32 %v1868_v59, %v226_v20  ;;  %v1974_v41 = vmul.f32 %v1870_v60, %v226_v20  ;;  %v1977_v42 = vmul.f32 %v1876_v1, %v246_v18 }
  0x85   :  { %v1968_v39 = vpop.permute.xlu0 %217  ;;  %v1980_v43 = vmul.f32 %v1878_v3, %v246_v18  ;;  %v1984_v45 = vmul.f32 %v1885_v7, %v246_v18  ;;  %v1987_v46 = vmul.f32 %v1887_v8, %v246_v18  ;;  %v1990_v47 = vmul.f32 %v1876_v1, %v226_v20 }
  0x86   :  { %2999 = vst [vmem:[#allocation19_spill] sm:$0xff] %v1968_v39  ;;  %v66_v44 = vpop.permute.xlu1 %65  ;;  %v1993_v48 = vmul.f32 %v1878_v3, %v226_v20  ;;  %v2003_v19 = vmul.f32 %v1857_v52, %v1968_v39  ;;  %v2007_v50 = vmul.f32 %v1859_v53, %v1968_v39  ;;  %v2010_v51 = vmul.f32 %v1885_v7, %v226_v20 }
  0x87   :  { %3000 = vst [vmem:[#allocation20_spill] sm:$0xff] %v1984_v45  ;;  %3001 = vst [vmem:[#allocation21_spill] sm:$0xff] %v1987_v46  ;;  %v2013_v54 = vmul.f32 %v1887_v8, %v226_v20  ;;  %v193_v55 = vmul.f32 %v1864_v57, %v66_v44  ;;  %v195_v56 = vmul.f32 %v1866_v58, %v66_v44 }
  0x88   :  { %3002 = vst [vmem:[#allocation22_spill] sm:$0xff] %v1990_v47  ;;  %3003 = vst [vmem:[#allocation23_spill] sm:$0xff] %v1993_v48  ;;  %v2019_v61 = vmul.f32 %v1868_v59, %v1968_v39  ;;  %v2023_v62 = vmul.f32 %v1870_v60, %v1968_v39  ;;  %v192_v18 = vmul.f32 %v1872_v63, %v66_v44 }
  0x89   :  { %3004 = vst [vmem:[#allocation24_spill] sm:$0xff] %v2010_v51  ;;  %3005 = vst [vmem:[#allocation25_spill] sm:$0xff] %v2013_v54  ;;  %v194_v2 = vmul.f32 %v1874_v0, %v66_v44  ;;  %v2028_v20 = vmul.f32 %v1881_v4, %v66_v44  ;;  %v2031_v5 = vmul.f32 %v1883_v6, %v66_v44 }
  0x8a   :  { %v2034_v26 = vpop.permute.xlu0 %70  ;;  %v2037_v54 = vmul.f32 %v1895_v11, %v66_v44  ;;  %v2040_v51 = vmul.f32 %v1897_v12, %v66_v44  ;;  %v2044_v48 = vmul.f32 %v1876_v1, %v1968_v39  ;;  %v2048_v47 = vmul.f32 %v1878_v3, %v1968_v39  ;;  %v670_v1 = vld [vmem:[%s2935_s4 + $0x30] sm:$0xff] }
  0x8b   :  { %3006 = vst [vmem:[#allocation26_spill] sm:$0xff] %v2028_v20  ;;  %3007 = vst [vmem:[#allocation27_spill] sm:$0xff] %v2031_v5  ;;  %v2050_v33 = vpop.permute.xlu1 %237  ;;  %v201_v8 = vmul.f32 %v1864_v57, %v2034_v26  ;;  %v203_v32 = vmul.f32 %v1866_v58, %v2034_v26  ;;  %v200_v44 = vmul.f32 %v1872_v63, %v2034_v26 }
  0x8c   :  { %3008 = vst [vmem:[#allocation28_spill] sm:$0xff] %v2037_v54  ;;  %3009 = vst [vmem:[#allocation29_spill] sm:$0xff] %v2040_v51  ;;  %v202_v51 = vmul.f32 %v1874_v0, %v2034_v26  ;;  %v3013_v54 = vmov 0   ;;  %v363_v5 = vmul.f32 %v1859_v53, %v2050_v33  ;;  %v360_v29 = vmul.f32 %v1868_v59, %v2050_v33 }
  0x8d   :  { %3010 = vst [vmem:[#allocation30_spill] sm:$0xff] %v2044_v48  ;;  %3011 = vst [vmem:[#allocation31_spill] sm:$0xff] %v2048_v47  ;;  %1675 = vset.pattern.permute.xlu1 %v3013_v54  ;;  %v2064_v47 = vld [vmem:[%s2936_s5 + $0x38] sm:$0xff]  ;;  %v361_v48 = vmul.f32 %v1857_v52, %v2050_v33  ;;  %v362_v20 = vmul.f32 %v1870_v60, %v2050_v33  ;;  %v433_v28 = vadd.f32 %v1890_v9, %v201_v8 }
  0x8e   :  { %3012 = vst [vmem:[#allocation32_spill] sm:$0xff] %v2050_v33  ;;  %3014 = vst [vmem:[#allocation33_spill] sm:$0xff] %v2064_v47  ;;  %1121 = vperm.xlu1 %1675, %v1103_v38   ;;  %v435_v46 = vadd.f32 %v1893_v10, %v203_v32  ;;  %v432_v27 = vadd.f32 %v1900_v13, %v200_v44  ;;  %v2079_v3 = vmul.f32 %v1885_v7, %v1968_v39  ;;  %v2085_v12 = vpop.permute.xlu0 %75 }
  0x8f   :  { %1680 = vset.pattern.permute.xlu0 %v3013_v54  ;;  %v434_v38 = vadd.f32 %v1903_v14, %v202_v51  ;;  %v2088_v33 = vadd.f32 %v361_v48, %v193_v55  ;;  %v2090_v8 = vadd.f32 %v363_v5, %v195_v56  ;;  %v2092_v9 = vadd.f32 %v360_v29, %v192_v18 }
  0x90   :  { %3015 = vst [vmem:[#allocation34_spill] sm:$0xff] %v2079_v3  ;;  %1146 = vperm.xlu0 %1680, %v2064_v47   ;;  %v209_v10 = vmul.f32 %v1864_v57, %v2085_v12  ;;  %v211_v13 = vmul.f32 %v1866_v58, %v2085_v12  ;;  %v208_v32 = vmul.f32 %v1872_v63, %v2085_v12  ;;  %v2103_v48 = vpop.permute.xlu1 %488 }
  0x91   :  { %v210_v14 = vmul.f32 %v1874_v0, %v2085_v12  ;;  %v2105_v5 = vadd.f32 %v362_v20, %v194_v2  ;;  %v2109_v29 = vmul.f32 %v1881_v4, %v2034_v26  ;;  %v2113_v51 = vmul.f32 %v1881_v4, %v2085_v12 }
  0x92   :  { %v2117_v55 = vmul.f32 %v1883_v6, %v2034_v26  ;;  %704 = vperm.xlu1 %1675, %v670_v1   ;;  %v441_v56 = vadd.f32 %v1942_v30, %v209_v10  ;;  %v545_v18 = vadd.f32 %v2103_v48, %v433_v28  ;;  %v547_v2 = vadd.f32 %v2103_v48, %v435_v46  ;;  %v2126_v44 = vpop.permute.xlu0 %60 }
  0x93   :  { %v2124_v20 = vmul.f32 %v1883_v6, %v2085_v12  ;;  %3016 = vst [vmem:[#allocation35_spill] sm:$0xff] %v2126_v44  ;;  %v443_v3 = vadd.f32 %v1945_v31, %v211_v13  ;;  %v440_v39 = vadd.f32 %v1954_v34, %v208_v32  ;;  %v544_v7 = vadd.f32 %v2103_v48, %v432_v27 }
  0x94   :  { %v546_v1 = vadd.f32 %v2103_v48, %v434_v38  ;;  %v609_v47 = vmax.f32 %v545_v18, 0.0  ;;  %v442_v30 = vadd.f32 %v1957_v35, %v210_v14  ;;  %v185_v28 = vmul.f32 %v1864_v57, %v2126_v44  ;;  %v2137_v10 = vpop.permute.xlu1 %50 }
  0x95   :  { %v187_v46 = vmul.f32 %v1866_v58, %v2126_v44  ;;  %3017 = vst [vmem:[#allocation36_spill] sm:$0xff] %v2137_v10  ;;  %v611_v6 = vmax.f32 %v547_v2, 0.0  ;;  %v608_v4 = vmax.f32 %v544_v7, 0.0  ;;  %v184_v31 = vmul.f32 %v1872_v63, %v2126_v44  ;;  %v671_v7 = vld [vmem:[%s2935_s4 + $0x38] sm:$0xff] }
  0x96   :  { %v186_v27 = vmul.f32 %v1874_v0, %v2126_v44  ;;  %1126 = vperm.xlu1 %1675, %v1914_v17   ;;  %v610_v34 = vmax.f32 %v546_v1, 0.0  ;;  %v2145_v35 = vadd.f32 %v1906_v15, %v185_v28  ;;  %v169_v38 = vmul.f32 %v1864_v57, %v2137_v10  ;;  %v2154_v32 = vpop.permute.xlu0 %493 }
  0x97   :  { %v171_v13 = vmul.f32 %v1866_v58, %v2137_v10  ;;  %v2157_v14 = vadd.f32 %v1909_v16, %v187_v46  ;;  %v2160_v17 = vadd.f32 %v1917_v21, %v184_v31  ;;  %v168_v15 = vmul.f32 %v1872_v63, %v2137_v10 }
  0x98   :  { %v170_v18 = vmul.f32 %v1874_v0, %v2137_v10  ;;  %v553_v2 = vadd.f32 %v2154_v32, %v441_v56  ;;  %v555_v1 = vadd.f32 %v2154_v32, %v443_v3  ;;  %v552_v28 = vadd.f32 %v2154_v32, %v440_v39  ;;  %v2170_v45 = vpop.permute.xlu1 %55 }
  0x99   :  { %v554_v44 = vadd.f32 %v2154_v32, %v442_v30  ;;  %v418_v16 = vadd.f32 %v1920_v22, %v186_v27  ;;  %v2174_v21 = vadd.f32 %v1960_v36, %v169_v38  ;;  %v2177_v46 = vadd.f32 %v1963_v37, %v171_v13 }
  0x9a   :  { %v2180_v31 = vadd.f32 %v1971_v40, %v168_v15  ;;  %709 = vperm.xlu1 %1675, %v671_v7   ;;  %v617_v56 = vmax.f32 %v553_v2, 0.0  ;;  %v619_v3 = vmax.f32 %v555_v1, 0.0  ;;  %v616_v10 = vmax.f32 %v552_v28, 0.0  ;;  %v2182_v25 = vpop.permute.xlu0 %483 }
  0x9b   :  { %v618_v39 = vmax.f32 %v554_v44, 0.0  ;;  %v177_v30 = vmul.f32 %v1864_v57, %v2170_v45  ;;  %v179_v22 = vmul.f32 %v1866_v58, %v2170_v45  ;;  %v176_v36 = vmul.f32 %v1872_v63, %v2170_v45 }
  0x9c   :  { %v2191_v37 = vadd.f32 %v1974_v41, %v170_v18  ;;  %v657_v40 = vpack.c.bf16 %v617_v56, %v609_v47  ;;  %v659_v27 = vpack.c.bf16 %v619_v3, %v611_v6  ;;  %v656_v38 = vpack.c.bf16 %v616_v10, %v608_v4  ;;  %v1106_v6 = vld [vmem:[%s2936_s5 + $0x28] sm:$0xff] }
  0x9d   :  { %v658_v13 = vpack.c.bf16 %v618_v39, %v610_v34  ;;  %v537_v44 = vadd.f32 %v2182_v25, %v2088_v33  ;;  %v539_v7 = vadd.f32 %v2182_v25, %v2090_v8  ;;  %v536_v15 = vadd.f32 %v2182_v25, %v2092_v9  ;;  %v2205_v4 = vpop.permute.xlu1 %229 }
  0x9e   :  { %v178_v2 = vmul.f32 %v1874_v0, %v2170_v45  ;;  %v3018_v1 = vmov 1   ;;  %753 = vmatprep.subr.bf16.mxu0 %v657_v40  ;;  %826 = vmatprep.subr.bf16.mxu1 %v659_v27  ;;  %v538_v33 = vadd.f32 %v2182_v25, %v2105_v5  ;;  %v437_v41 = vadd.f32 %v1923_v23, %v2109_v29 }
  0x9f   :  { %1677 = vset.pattern.permute.xlu1 %v3018_v1  ;;  %v445_v47 = vadd.f32 %v1977_v42, %v2113_v51  ;;  %754 = vmatpush1.bf16.msra.mxu0 %v656_v38  ;;  %v601_v8 = vmax.f32 %v537_v44, 0.0  ;;  %v603_v9 = vmax.f32 %v539_v7, 0.0  ;;  %v600_v10 = vmax.f32 %v536_v15, 0.0  ;;  %v2231_v7 = vpop.permute.xlu0 %473 }
  0xa0   :  { %827 = vmatpush1.bf16.msra.mxu1 %v658_v13  ;;  %v439_v34 = vadd.f32 %v1926_v24, %v2117_v55  ;;  %v345_v18 = vmul.f32 %v1857_v52, %v2205_v4  ;;  %v347_v5 = vmul.f32 %v1859_v53, %v2205_v4  ;;  %v344_v23 = vmul.f32 %v1868_v59, %v2205_v4 }
  0xa1   :  { %v346_v42 = vmul.f32 %v1870_v60, %v2205_v4  ;;  %1352 = vperm.xlu1 %1677, %v1106_v6   ;;  %v549_v29 = vadd.f32 %v2103_v48, %v437_v41  ;;  %v557_v51 = vadd.f32 %v2154_v32, %v445_v47  ;;  %v447_v24 = vadd.f32 %v1980_v43, %v2124_v20 }
  0xa2   :  { %v551_v55 = vadd.f32 %v2103_v48, %v439_v34  ;;  %v602_v28 = vmax.f32 %v538_v33, 0.0  ;;  %v409_v56 = vadd.f32 %v345_v18, %v177_v30  ;;  %v411_v3 = vadd.f32 %v347_v5, %v179_v22  ;;  %v2228_v40 = vpop.permute.xlu1 %478 }
  0xa3   :  { %v408_v39 = vadd.f32 %v344_v23, %v176_v36  ;;  %v410_v27 = vadd.f32 %v346_v42, %v178_v2  ;;  %v613_v38 = vmax.f32 %v549_v29, 0.0  ;;  %v621_v13 = vmax.f32 %v557_v51, 0.0 }
  0xa4   :  { %v559_v44 = vadd.f32 %v2154_v32, %v447_v24  ;;  %v529_v15 = vadd.f32 %v2228_v40, %v2145_v35  ;;  %v531_v43 = vadd.f32 %v2228_v40, %v2157_v14  ;;  %v528_v20 = vadd.f32 %v2228_v40, %v2160_v17 }
  0xa5   :  { %v530_v30 = vadd.f32 %v2228_v40, %v418_v16  ;;  %1678 = vset.pattern.permute.xlu1 %v3013_v54  ;;  %v2242_v22 = vadd.f32 %v2231_v7, %v409_v56  ;;  %v2245_v36 = vadd.f32 %v2231_v7, %v411_v3  ;;  %v2248_v2 = vadd.f32 %v2231_v7, %v408_v39 }
  0xa6   :  { %v615_v35 = vmax.f32 %v551_v55, 0.0  ;;  %1136 = vperm.xlu1 %1678, %v1106_v6   ;;  %v593_v33 = vmax.f32 %v529_v15, 0.0  ;;  %v595_v14 = vmax.f32 %v531_v43, 0.0  ;;  %v592_v41 = vmax.f32 %v528_v20, 0.0  ;;  %v2250_v17 = vpop.permute.xlu1 %40  ;;  %v3019_v20 = vld [vmem:[#allocation13_spill] sm:$0xff] }
  0xa7   :  { %v594_v47 = vmax.f32 %v530_v30, 0.0  ;;  %v585_v16 = vmax.f32 %v2242_v22, 0.0  ;;  %v2256_v5 = vadd.f32 %v2231_v7, %v410_v27  ;;  %v153_v6 = vmul.f32 %v1864_v57, %v2250_v17  ;;  %v3020_v30 = vld [vmem:[#allocation20_spill] sm:$0xff] }
  0xa8   :  { %v649_v23 = vpack.c.bf16 %v601_v8, %v593_v33  ;;  %v651_v42 = vpack.c.bf16 %v603_v9, %v595_v14  ;;  %v648_v29 = vpack.c.bf16 %v600_v10, %v592_v41  ;;  %v155_v24 = vmul.f32 %v1866_v58, %v2250_v17  ;;  %v3022_v14 = vld [vmem:[#allocation35_spill] sm:$0xff]  ;;  %v3023_v41 = vld [vmem:[#allocation8_spill] sm:$0xff] }
  0xa9   :  { %v650_v51 = vpack.c.bf16 %v602_v28, %v594_v47  ;;  %v152_v55 = vmul.f32 %v1872_v63, %v2250_v17  ;;  %v154_v56 = vmul.f32 %v1874_v0, %v2250_v17  ;;  %v2267_v8 = vpack.c.bf16 %v621_v13, %v613_v38  ;;  %v3024_v47 = vld [vmem:[#allocation32_spill] sm:$0xff] }
  0xaa   :  { %1141 = vperm.xlu1 %1678, %v1999_v49   ;;  %755 = vmatprep.subr.bf16.mxu0 %v649_v23  ;;  %v623_v9 = vmax.f32 %v559_v44, 0.0  ;;  %v204_v10 = vmul.f32 %v1895_v11, %v2034_v26  ;;  %v212_v28 = vmul.f32 %v1895_v11, %v2085_v12  ;;  %v2273_v3 = vpop.permute.xlu1 %45  ;;  %v2277_v27 = vadd.f32 %v2003_v19, %v153_v6 }
  0xab   :  { %828 = vmatprep.subr.bf16.mxu1 %v651_v42  ;;  %756 = vmatpush1.bf16.msra.mxu0 %v648_v29  ;;  %v2280_v49 = vadd.f32 %v2007_v50, %v155_v24  ;;  %v2283_v38 = vadd.f32 %v2019_v61, %v152_v55  ;;  %v161_v13 = vmul.f32 %v1864_v57, %v2273_v3  ;;  %v3021_v57 = vld [vmem:[#allocation12_spill] sm:$0xff] }
  0xac   :  { %829 = vmatpush1.bf16.msra.mxu1 %v650_v51  ;;  %v163_v44 = vmul.f32 %v1866_v58, %v2273_v3  ;;  %v160_v15 = vmul.f32 %v1872_v63, %v2273_v3  ;;  %v162_v43 = vmul.f32 %v1874_v0, %v2273_v3  ;;  %v2294_v19 = vadd.f32 %v2023_v62, %v154_v56  ;;  %v3025_v62 = vld [vmem:[#allocation6_spill] sm:$0xff]  ;;  %v3030_v56 = vld [vmem:[#allocation21_spill] sm:$0xff] }
  0xad   :  { %v2296_v50 = vpack.c.bf16 %v623_v9, %v615_v35  ;;  %v436_v61 = vadd.f32 %v3019_v20, %v204_v10  ;;  %v444_v33 = vadd.f32 %v3020_v30, %v212_v28  ;;  %v206_v58 = vmul.f32 %v3021_v57, %v2034_v26  ;;  %v3026_v35 = vld [vmem:[#allocation33_spill] sm:$0xff]  ;;  %v3028_v26 = vld [vmem:[#allocation7_spill] sm:$0xff]  ;;  %v3032_v20 = vld [vmem:[#allocation26_spill] sm:$0xff] }
  0xae   :  { %1679 = vset.pattern.permute.xlu1 %v3018_v1  ;;  %v214_v63 = vmul.f32 %v3021_v57, %v2085_v12  ;;  %v189_v0 = vmul.f32 %v3023_v41, %v3022_v14  ;;  %v365_v23 = vmul.f32 %v3025_v62, %v3024_v47  ;;  %v3027_v1 = vld [vmem:[#allocation9_spill] sm:$0xff]  ;;  %v367_v6 = vmul.f32 %v3028_v26, %v3024_v47  ;;  %v3029_v12 = vld [vmem:[#allocation14_spill] sm:$0xff]  ;;  %v3031_v10 = vld [vmem:[#allocation15_spill] sm:$0xff] }
  0xaf   :  { %1360 = vperm.xlu1 %1679, %v3026_v35   ;;  %v548_v42 = vadd.f32 %v2103_v48, %v436_v61  ;;  %v556_v29 = vadd.f32 %v2154_v32, %v444_v33  ;;  %v191_v51 = vmul.f32 %v3027_v1, %v3022_v14  ;;  %v2316_v24 = vpop.permute.xlu1 %221  ;;  %v438_v55 = vadd.f32 %v3029_v12, %v206_v58  ;;  %v1531_v61 = vld [vmem:[%s2937_s6 + $0x1] sm:$0x1] }
  0xb0   :  { %v446_v9 = vadd.f32 %v3030_v56, %v214_v63  ;;  %v421_v28 = vadd.f32 %v3031_v10, %v189_v0  ;;  %v429_v30 = vadd.f32 %v365_v23, %v3032_v20  ;;  %v329_v33 = vmul.f32 %v1857_v52, %v2316_v24 }
  0xb1   :  { %v331_v35 = vmul.f32 %v1859_v53, %v2316_v24  ;;  %v328_v39 = vmul.f32 %v1868_v59, %v2316_v24  ;;  %v330_v58 = vmul.f32 %v1870_v60, %v2316_v24  ;;  %v612_v63 = vmax.f32 %v548_v42, 0.0  ;;  %v1317_v60 = vld [vmem:[%s2937_s6] sm:$0x1]  ;;  %v3033_v42 = vld [vmem:[#allocation16_spill] sm:$0xff] }
  0xb2   :  { %v620_v0 = vmax.f32 %v556_v29, 0.0  ;;  %v550_v23 = vadd.f32 %v2103_v48, %v438_v55  ;;  %v558_v12 = vadd.f32 %v2154_v32, %v446_v9  ;;  %v393_v56 = vadd.f32 %v329_v33, %v161_v13 }
  0xb3   :  { %1681 = vset.pattern.permute.xlu1 %v3013_v54  ;;  %v395_v10 = vadd.f32 %v331_v35, %v163_v44  ;;  %v392_v52 = vadd.f32 %v328_v39, %v160_v15  ;;  %v394_v20 = vadd.f32 %v330_v58, %v162_v43  ;;  %v533_v34 = vadd.f32 %v2228_v40, %v421_v28  ;;  %v3034_v44 = vld [vmem:[#allocation27_spill] sm:$0xff] }
  0xb4   :  { %1534 = vperm.xlu1 %1681, %v1531_v61   ;;  %v2336_v53 = vpack.c.bf16 %v620_v0, %v612_v63  ;;  %v614_v18 = vmax.f32 %v550_v23, 0.0  ;;  %v622_v59 = vmax.f32 %v558_v12, 0.0  ;;  %v2342_v48 = vpop.permute.xlu1 %468  ;;  %v541_v32 = vadd.f32 %v2182_v25, %v429_v30 }
  0xb5   :  { %v423_v13 = vadd.f32 %v3033_v42, %v191_v51  ;;  %v431_v39 = vadd.f32 %v367_v6, %v3034_v44  ;;  %v188_v15 = vmul.f32 %v1895_v11, %v3022_v14  ;;  %v513_v43 = vadd.f32 %v2342_v48, %v2174_v21 }
  0xb6   :  { %v515_v29 = vadd.f32 %v2342_v48, %v2177_v46  ;;  %v512_v55 = vadd.f32 %v2342_v48, %v2180_v31  ;;  %v514_v9 = vadd.f32 %v2342_v48, %v2191_v37  ;;  %v2357_v28 = vpack.c.bf16 %v622_v59, %v614_v18  ;;  %v3035_v37 = vld [vmem:[#allocation10_spill] sm:$0xff] }
  0xb7   :  { %v597_v51 = vmax.f32 %v533_v34, 0.0  ;;  %v605_v30 = vmax.f32 %v541_v32, 0.0  ;;  %v535_v6 = vadd.f32 %v2228_v40, %v423_v13  ;;  %v577_v61 = vmax.f32 %v513_v43, 0.0 }
  0xb8   :  { %1320 = vperm.xlu1 %1681, %v1317_v60   ;;  %v579_v33 = vmax.f32 %v515_v29, 0.0  ;;  %v576_v35 = vmax.f32 %v512_v55, 0.0  ;;  %v578_v21 = vmax.f32 %v514_v9, 0.0  ;;  %v2360_v58 = vpop.permute.xlu1 %458  ;;  %v543_v31 = vadd.f32 %v2182_v25, %v431_v39  ;;  %v3040_v39 = vld [vmem:[#allocation28_spill] sm:$0xff] }
  0xb9   :  { %v2362_v46 = vpack.c.bf16 %v605_v30, %v597_v51  ;;  %v599_v63 = vmax.f32 %v535_v6, 0.0  ;;  %v364_v18 = vmul.f32 %v3035_v37, %v3024_v47  ;;  %v641_v34 = vpack.c.bf16 %v585_v16, %v577_v61  ;;  %v3041_v61 = vld [vmem:[#allocation11_spill] sm:$0xff] }
  0xba   :  { %v3036_v0 = vmax.f32 %v2245_v36, 0.0  ;;  %v3037_v12 = vmax.f32 %v2248_v2, 0.0  ;;  %v3038_v60 = vmax.f32 %v2256_v5, 0.0  ;;  %v497_v42 = vadd.f32 %v2360_v58, %v2277_v27  ;;  %v3039_v2 = vld [vmem:[#allocation17_spill] sm:$0xff] }
  0xbb   :  { %v499_v13 = vadd.f32 %v2360_v58, %v2280_v49  ;;  %v496_v44 = vadd.f32 %v2360_v58, %v2283_v38  ;;  %v498_v22 = vadd.f32 %v2360_v58, %v2294_v19  ;;  %757 = vmatprep.subr.bf16.mxu0 %v641_v34  ;;  %v607_v36 = vmax.f32 %v543_v31, 0.0 }
  0xbc   :  { %v643_v23 = vpack.c.bf16 %v3036_v0, %v579_v33  ;;  %v640_v59 = vpack.c.bf16 %v3037_v12, %v576_v35  ;;  %v642_v32 = vpack.c.bf16 %v3038_v60, %v578_v21  ;;  %v420_v16 = vadd.f32 %v3039_v2, %v188_v15  ;;  %v2387_v27 = vpop.permute.xlu1 %463  ;;  %v3042_v0 = vld [vmem:[#allocation18_spill] sm:$0xff] }
  0xbd   :  { %v428_v5 = vadd.f32 %v364_v18, %v3040_v39  ;;  %v190_v43 = vmul.f32 %v3021_v57, %v3022_v14  ;;  %v561_v49 = vmax.f32 %v497_v42, 0.0  ;;  %v563_v29 = vmax.f32 %v499_v13, 0.0 }
  0xbe   :  { %830 = vmatprep.subr.bf16.mxu1 %v643_v23  ;;  %758 = vmatpush1.bf16.msra.mxu0 %v640_v59  ;;  %v560_v38 = vmax.f32 %v496_v44, 0.0  ;;  %v562_v55 = vmax.f32 %v498_v22, 0.0  ;;  %v505_v19 = vadd.f32 %v2387_v27, %v393_v56  ;;  %v507_v9 = vadd.f32 %v2387_v27, %v395_v10  ;;  %v3043_v23 = vld [vmem:[#allocation29_spill] sm:$0xff]  ;;  %v2406_v44 = vld [vmem:[%s2934_s3] sm:$0xff]  }
  0xbf   :  { %831 = vmatpush1.bf16.msra.mxu1 %v642_v32  ;;  %v504_v51 = vadd.f32 %v2387_v27, %v392_v52  ;;  %v506_v15 = vadd.f32 %v2387_v27, %v394_v20  ;;  %v655_v30 = vpack.c.bf16 %v607_v36, %v599_v63  ;;  %v532_v6 = vadd.f32 %v2228_v40, %v420_v16  ;;  %v3045_v16 = vld [vmem:[#allocation22_spill] sm:$0xff] }
  0xc0   :  { %v540_v14 = vadd.f32 %v2182_v25, %v428_v5  ;;  %v366_v33 = vmul.f32 %v3041_v61, %v3024_v47  ;;  %v569_v35 = vmax.f32 %v505_v19, 0.0  ;;  %v571_v21 = vmax.f32 %v507_v9, 0.0  ;;  %v3044_v47 = vld [vmem:[#allocation36_spill] sm:$0xff] }
  0xc1   :  { %v568_v31 = vmax.f32 %v504_v51, 0.0  ;;  %v570_v18 = vmax.f32 %v506_v15, 0.0  ;;  %v596_v34 = vmax.f32 %v532_v6, 0.0  ;;  %v422_v10 = vadd.f32 %v3042_v0, %v190_v43 }
  0xc2   :  { %v604_v56 = vmax.f32 %v540_v14, 0.0  ;;  %v430_v52 = vadd.f32 %v366_v33, %v3043_v23  ;;  %v633_v12 = vpack.c.bf16 %v569_v35, %v561_v49  ;;  %v635_v20 = vpack.c.bf16 %v571_v21, %v563_v29  ;;  %v3046_v29 = vld [vmem:[#allocation23_spill] sm:$0xff]  ;;  %v3047_v33 = vld [vmem:[#allocation24_spill] sm:$0xff]  ;;  %v3048_v23 = vld [vmem:[#allocation25_spill] sm:$0xff] }
  0xc3   :  { %v632_v63 = vpack.c.bf16 %v568_v31, %v560_v38  ;;  %v634_v59 = vpack.c.bf16 %v570_v18, %v562_v55  ;;  %v534_v32 = vadd.f32 %v2228_v40, %v422_v10  ;;  %v173_v13 = vmul.f32 %v3023_v41, %v3044_v47 }
  0xc4   :  { %v652_v60 = vpack.c.bf16 %v604_v56, %v596_v34  ;;  %v542_v42 = vadd.f32 %v2182_v25, %v430_v52  ;;  %759 = vmatprep.subr.bf16.mxu0 %v633_v12  ;;  %832 = vmatprep.subr.bf16.mxu1 %v635_v20  ;;  %v181_v22 = vmul.f32 %v3023_v41, %v2170_v45 }
  0xc5   :  { %v349_v36 = vmul.f32 %v3025_v62, %v2205_v4  ;;  %v175_v25 = vmul.f32 %v3027_v1, %v3044_v47  ;;  %760 = vmatpush1.bf16.msra.mxu0 %v632_v63  ;;  %833 = vmatpush1.bf16.msra.mxu1 %v634_v59  ;;  %v598_v40 = vmax.f32 %v534_v32, 0.0  ;;  %v405_v39 = vadd.f32 %v3045_v16, %v173_v13  ;;  %v3050_v16 = vld [vmem:[#allocation31_spill] sm:$0xff] }
  0xc6   :  { %v606_v2 = vmax.f32 %v542_v42, 0.0  ;;  %v183_v5 = vmul.f32 %v3027_v1, %v2170_v45  ;;  %899 = vmatprep.subr.bf16.mxu0 %v2267_v8  ;;  %972 = vmatprep.subr.bf16.mxu1 %v2296_v50  ;;  %v351_v49 = vmul.f32 %v3028_v26, %v2205_v4  ;;  %v172_v9 = vmul.f32 %v1895_v11, %v3044_v47 }
  0xc7   :  { %v413_v43 = vadd.f32 %v349_v36, %v181_v22  ;;  %v407_v38 = vadd.f32 %v3046_v29, %v175_v25  ;;  %v517_v19 = vadd.f32 %v2342_v48, %v405_v39  ;;  %v180_v51 = vmul.f32 %v1895_v11, %v2170_v45  ;;  %v3051_v29 = vld [vmem:[#allocation19_spill] sm:$0xff] }
  0xc8   :  { %v654_v55 = vpack.c.bf16 %v606_v2, %v598_v40  ;;  %1642 = vmatmul.mubr.msk.bf16.vlgmr.msra.gmra.mxu0 %vm732_vm0, %v2406_v44  ;;  %1646 = vmatmul.mubr.msk.bf16.vlgmr.msra.gmra.mxu1 %vm732_vm0, %v2406_v44  ;;  %v415_v50 = vadd.f32 %v351_v49, %v183_v5  ;;  %v348_v14 = vmul.f32 %v3035_v37, %v2205_v4 }
  0xc9   :  { %v525_v8 = vadd.f32 %v2231_v7, %v413_v43  ;;  %v519_v15 = vadd.f32 %v2342_v48, %v407_v38  ;;  %900 = vmatpush1.bf16.msra.mxu0 %v2336_v53  ;;  %973 = vmatpush1.bf16.msra.mxu1 %v2357_v28  ;;  %v581_v6 = vmax.f32 %v517_v19, 0.0  ;;  %v404_v35 = vadd.f32 %v3047_v33, %v172_v9  ;;  %v3052_v9 = vld [vmem:[#allocation34_spill] sm:$0xff] }
  0xca   :  { %v174_v21 = vmul.f32 %v3021_v57, %v3044_v47  ;;  %901 = vmatprep.subr.bf16.mxu0 %v2362_v46  ;;  %974 = vmatprep.subr.bf16.mxu1 %v655_v30  ;;  %v527_v18 = vadd.f32 %v2231_v7, %v415_v50  ;;  %v182_v53 = vmul.f32 %v3021_v57, %v2170_v45  ;;  %v2452_v30 = vld [vmem:[%s2934_s3 + $0x8] sm:$0xff]   ;;  %v3049_v47 = vld [vmem:[#allocation30_spill] sm:$0xff] }
  0xcb   :  { %v589_v31 = vmax.f32 %v525_v8, 0.0  ;;  %v583_v34 = vmax.f32 %v519_v15, 0.0  ;;  %787 = vmatprep.mubr.bf16.mxu0 %v3013_v54  ;;  %860 = vmatprep.mubr.bf16.mxu1 %v3013_v54  ;;  %v412_v28 = vadd.f32 %v348_v14, %v180_v51  ;;  %v516_v56 = vadd.f32 %v2342_v48, %v404_v35 }
  0xcc   :  { %v350_v0 = vmul.f32 %v3041_v61, %v2205_v4  ;;  %v591_v46 = vmax.f32 %v527_v18, 0.0  ;;  %v406_v52 = vadd.f32 %v3048_v23, %v174_v21  ;;  %v157_v45 = vmul.f32 %v3023_v41, %v2250_v17 }
  0xcd   :  { %v645_v10 = vpack.c.bf16 %v589_v31, %v581_v6  ;;  %902 = vmatpush1.bf16.msra.mxu0 %v652_v60  ;;  %975 = vmatpush1.bf16.msra.mxu1 %v654_v55  ;;  %v524_v12 = vadd.f32 %v2231_v7, %v412_v28  ;;  %v580_v20 = vmax.f32 %v516_v56, 0.0  ;;  %v165_v4 = vmul.f32 %v3023_v41, %v2273_v3  ;;  %v1684_v6 = vld [vmem:[%s2934_s3 + $0x10] sm:$0xff]  }
  0xce   :  { %v414_v63 = vadd.f32 %v350_v0, %v182_v53  ;;  %v647_v59 = vpack.c.bf16 %v591_v46, %v583_v34  ;;  %v518_v32 = vadd.f32 %v2342_v48, %v406_v52  ;;  %v333_v42 = vmul.f32 %v3025_v62, %v2316_v24 }
  0xcf   :  { %903 = vmatprep.subr.bf16.mxu0 %v645_v10  ;;  %v389_v13 = vadd.f32 %v3049_v47, %v157_v45  ;;  %v588_v22 = vmax.f32 %v524_v12, 0.0  ;;  %v159_v36 = vmul.f32 %v3027_v1, %v2250_v17  ;;  %v167_v25 = vmul.f32 %v3027_v1, %v2273_v3 }
  0xd0   :  { %v526_v60 = vadd.f32 %v2231_v7, %v414_v63  ;;  %976 = vmatprep.subr.bf16.mxu1 %v647_v59  ;;  %1643 = vmatmul.mubr.msk.bf16.gmra.mxu0 %vm732_vm0, %v2452_v30  ;;  %v582_v41 = vmax.f32 %v518_v32, 0.0  ;;  %v397_v48 = vadd.f32 %v333_v42, %v165_v4  ;;  %v335_v62 = vmul.f32 %v3028_v26, %v2316_v24 }
  0xd1   :  { %v501_v40 = vadd.f32 %v2360_v58, %v389_v13  ;;  %1647 = vmatmul.mubr.msk.bf16.gmra.mxu1 %vm732_vm0, %v2452_v30  ;;  %v644_v7 = vpack.c.bf16 %v588_v22, %v580_v20  ;;  %v391_v39 = vadd.f32 %v3050_v16, %v159_v36  ;;  %v156_v1 = vmul.f32 %v1895_v11, %v2250_v17 }
  0xd2   :  { %v590_v2 = vmax.f32 %v526_v60, 0.0  ;;  %797 = vmatprep.mubr.bf16.mxu0 %v3013_v54  ;;  %v509_v5 = vadd.f32 %v2387_v27, %v397_v48  ;;  %v399_v43 = vadd.f32 %v335_v62, %v167_v25  ;;  %v164_v49 = vmul.f32 %v1895_v11, %v2273_v3  ;;  %870 = vmatprep.mubr.bf16.mxu1 %v3013_v54 }
  0xd3   :  { %v326_v26 = vmul.f32 %v3041_v61, %v3051_v29  ;;  %904 = vmatpush1.bf16.msra.mxu0 %v644_v7  ;;  %v503_v55 = vadd.f32 %v2360_v58, %v391_v39  ;;  %v332_v19 = vmul.f32 %v3035_v37, %v2316_v24  ;;  %v388_v51 = vadd.f32 %v3052_v9, %v156_v1 }
  0xd4   :  { %v646_v38 = vpack.c.bf16 %v590_v2, %v582_v41  ;;  %v565_v8 = vmax.f32 %v501_v40, 0.0  ;;  %v573_v50 = vmax.f32 %v509_v5, 0.0  ;;  %v511_v15 = vadd.f32 %v2387_v27, %v399_v43 }
  0xd5   :  { %v158_v11 = vmul.f32 %v3021_v57, %v2250_v17  ;;  %v396_v14 = vadd.f32 %v332_v19, %v164_v49  ;;  %v500_v33 = vadd.f32 %v2360_v58, %v388_v51  ;;  %v166_v37 = vmul.f32 %v3021_v57, %v2273_v3 }
  0xd6   :  { %977 = vmatpush1.bf16.msra.mxu1 %v646_v38  ;;  %v334_v35 = vmul.f32 %v3041_v61, %v2316_v24  ;;  %v637_v21 = vpack.c.bf16 %v573_v50, %v565_v8  ;;  %v567_v31 = vmax.f32 %v503_v55, 0.0  ;;  %v575_v18 = vmax.f32 %v511_v15, 0.0  ;;  %v3056_v55 = vld [vmem:[#allocation5_spill] sm:$0xff] }
  0xd7   :  { %v390_v34 = vadd.f32 %v326_v26, %v158_v11  ;;  %v508_v17 = vadd.f32 %v2387_v27, %v396_v14  ;;  %v564_v0 = vmax.f32 %v500_v33, 0.0  ;;  %v1710_v47 = vmov 1983009808  }
  0xd8   :  { %v398_v53 = vadd.f32 %v334_v35, %v166_v37  ;;  %905 = vmatprep.subr.bf16.mxu0 %v637_v21  ;;  %v639_v28 = vpack.c.bf16 %v575_v18, %v567_v31  ;;  %1644 = vmatmul.mubr.msk.bf16.gmra.mxu0 %vm732_vm0, %v1684_v6  ;;  %v1589_v13 = vunpack.c.l.s4 %v1710_v47 }
  0xd9   :  { %v502_v56 = vadd.f32 %v2360_v58, %v390_v34  ;;  %v572_v10 = vmax.f32 %v508_v17, 0.0  ;;  %1648 = vmatmul.mubr.msk.bf16.gmra.mxu1 %vm732_vm0, %v1684_v6  ;;  %807 = vmatprep.mubr.bf16.mxu0 %v3013_v54  ;;  %v1685_v58 = vld [vmem:[%s2934_s3 + $0x18] sm:$0xff]   ;;  %s1711_s3 = smov [#allocation2]  }
  0xda   :  { %v510_v3 = vadd.f32 %v2387_v27, %v398_v53  ;;  %978 = vmatprep.subr.bf16.mxu1 %v639_v28  ;;  %880 = vmatprep.mubr.bf16.mxu1 %v3013_v54  ;;  %v2533_v27 = vpop.permute.xlu1 %679  ;;  %v1590_v41 = vunpack.c.0.s8 %v1589_v13  ;;  %s1630_s27 = sshll.u32 %s1711_s3, 4  ;;  %s1631_s27 = int_to_ptr.vmem [resolvable:$true] %s1630_s27 }
  0xdb   :  { %v636_v57 = vpack.c.bf16 %v572_v10, %v564_v0  ;;  %v566_v24 = vmax.f32 %v502_v56, 0.0  ;;  %s1686_s0 = scalar_lea.vmem %s1631_s27, 256  ;;  %p1691_p1 = scmp.lt.s32.totalorder %s1631_s27, %s1631_s27 }
  0xdc   :  { %v574_v61 = vmax.f32 %v510_v3, 0.0  ;;  %v2568_v19 = vsub.s32 %v1590_v41, %v3056_v55  ;;  %p1687_p0 = scmp.ne.s32.totalorder %s1631_s27, %s1686_s0  ;;  %p1692_p2 = scmp.lt.s32.totalorder %s1686_s0, %s1686_s0 }
  0xdd   :  { %906 = vmatpush1.bf16.msra.mxu0 %v636_v57 }
  0xde   :  { %v638_v46 = vpack.c.bf16 %v574_v61, %v566_v24  ;;  %3057 = vst [vmem:[#allocation35_spill] sm:$0xff] %v2568_v19  ;;  %p1693_p3 = por %p1692_p2, %p1691_p1 }
  0xe0   :  { %979 = vmatpush1.bf16.msra.mxu1 %v638_v46  ;;  %1645 = vmatmul.mubr.msk.bf16.gmra.mxu0 %vm732_vm0, %v1685_v58  ;;  %p1694_p4 = pnand %p1693_p3, %p1687_p0 }
  0xe1   :  { %1649 = vmatmul.mubr.msk.bf16.gmra.mxu1 %vm732_vm0, %v1685_v58  ;;  %923 = vmatprep.mubr.bf16.mxu0 %v3013_v54 }
  0xe2   :  { %996 = vmatprep.mubr.bf16.mxu1 %v3013_v54 }
  0xe8   :  { %1650 = vmatmul.mubr.msk.bf16.vlgmr.msra.gmra.mxu0 %vm732_vm0, %v2406_v44 }
  0xe9   :  { %1654 = vmatmul.mubr.msk.bf16.vlgmr.msra.gmra.mxu1 %vm732_vm0, %v2406_v44  ;;  %933 = vmatprep.mubr.bf16.mxu0 %v3013_v54  ;;  %v2535_v44 = vpop.permute.xlu1 %689 }
  0xea   :  { %1006 = vmatprep.mubr.bf16.mxu1 %v3013_v54 }
  0xed   :  { %v2539_v23 = vpop.permute.xlu1 %1336 }
  0xf0   :  { %1651 = vmatmul.mubr.msk.bf16.gmra.mxu0 %vm732_vm0, %v2452_v30 }
  0xf1   :  { %1655 = vmatmul.mubr.msk.bf16.gmra.mxu1 %vm732_vm0, %v2452_v30  ;;  %943 = vmatprep.mubr.bf16.mxu0 %v3013_v54  ;;  %v2537_v30 = vpop.permute.xlu0 %674  ;;  %v2543_v45 = vpop.permute.xlu1 %694 }
  0xf2   :  { %1016 = vmatprep.mubr.bf16.mxu1 %v3013_v54 }
  0xf5   :  { %v2541_v52 = vpop.permute.xlu0 %684  ;;  %v2547_v20 = vpop.permute.xlu1 %1116 }
  0xf8   :  { %1652 = vmatmul.mubr.msk.bf16.gmra.mxu0 %vm732_vm0, %v1684_v6 }
  0xf9   :  { %1656 = vmatmul.mubr.msk.bf16.gmra.mxu1 %vm732_vm0, %v1684_v6  ;;  %953 = vmatprep.mubr.bf16.mxu0 %v3013_v54  ;;  %v2545_v12 = vpop.permute.xlu0 %1111  ;;  %v2551_v63 = vpop.permute.xlu1 %1340 }
  0xfa   :  { %1026 = vmatprep.mubr.bf16.mxu1 %v3013_v54 }
  0xfd   :  { %v2549_v54 = vpop.permute.xlu0 %699 }
  0xfe   :  { %3053 = vst [vmem:[#allocation13_spill] sm:$0xff] %v2549_v54 }
 0x100   :  { %1653 = vmatmul.mubr.msk.bf16.gmra.mxu0 %vm732_vm0, %v1685_v58 }
 0x101   :  { %1657 = vmatmul.mubr.msk.bf16.gmra.mxu1 %vm732_vm0, %v1685_v58  ;;  %v2553_v4 = vpop.permute.xlu0 %1131 }
 0x102   :  { %3054 = vst [vmem:[#allocation20_spill] sm:$0xff] %v2553_v4 }
 0x105   :  { %v2561_v2 = vpop.permute.xlu0 %1332 }
 0x109   :  { %v2555_v59 = vpop.permute.xlu1 %1121 }
 0x10d   :  { %v2563_v43 = vpop.permute.xlu1 %704 }
 0x10e   :  { %3055 = vst [vmem:[#allocation12_spill] sm:$0xff] %v2563_v43 }
 0x188   :  { %v779_v32 = vpop.f32.mrf.mxu0  ;;  %v852_v42 = vpop.f32.mrf.mxu1 }
 0x189   :  { %v780_v22 = vadd.f32 %v779_v32, %v2537_v30  ;;  %v853_v60 = vadd.f32 %v852_v42, %v2537_v30  ;;  %v2587_v42 = vpop.permute.xlu1 %1126 }
 0x18a   :  { %v781_v36 = vpop.f32.mrf.mxu0  ;;  %v854_v25 = vpop.f32.mrf.mxu1 }
 0x18b   :  { %v1037_v48 = vmax.f32 %v780_v22, 0.0  ;;  %v1039_v40 = vmax.f32 %v853_v60, 0.0  ;;  %v782_v62 = vadd.f32 %v781_v36, %v2537_v30  ;;  %v855_v7 = vadd.f32 %v854_v25, %v2537_v30 }
 0x18c   :  { %v783_v16 = vpop.f32.mrf.mxu0  ;;  %v856_v39 = vpop.f32.mrf.mxu1 }
 0x18d   :  { %v1038_v1 = vmax.f32 %v782_v62, 0.0  ;;  %v1040_v5 = vmax.f32 %v855_v7, 0.0  ;;  %v784_v49 = vadd.f32 %v783_v16, %v2533_v27  ;;  %v857_v29 = vadd.f32 %v856_v39, %v2533_v27 }
 0x18e   :  { %v785_v26 = vpop.f32.mrf.mxu0  ;;  %v858_v38 = vpop.f32.mrf.mxu1  ;;  %v1149_v9 = vmul.f32 %v2545_v12, %v1037_v48  ;;  %v1151_v51 = vmul.f32 %v2545_v12, %v1039_v40  ;;  %v1363_v8 = vmul.f32 %v2561_v2, %v1037_v48  ;;  %v1365_v6 = vmul.f32 %v2561_v2, %v1039_v40 }
 0x18f   :  { %v786_v50 = vadd.f32 %v785_v26, %v2533_v27  ;;  %v1045_v15 = vmax.f32 %v784_v49, 0.0  ;;  %v1047_v11 = vmax.f32 %v857_v29, 0.0  ;;  %v859_v14 = vadd.f32 %v858_v38, %v2533_v27 }
 0x190   :  { %v789_v33 = vpop.f32.mrf.mxu0  ;;  %v1150_v37 = vmul.f32 %v2545_v12, %v1038_v1  ;;  %v1152_v35 = vmul.f32 %v2545_v12, %v1040_v5  ;;  %v1364_v46 = vmul.f32 %v2561_v2, %v1038_v1  ;;  %v1366_v32 = vmul.f32 %v2561_v2, %v1040_v5 }
 0x191   :  { %v1046_v21 = vmax.f32 %v786_v50, 0.0  ;;  %v790_v31 = vadd.f32 %v789_v33, %v2541_v52  ;;  %v862_v18 = vpop.f32.mrf.mxu1  ;;  %v1157_v34 = vmul.f32 %v2547_v20, %v1045_v15  ;;  %v1371_v17 = vmul.f32 %v2539_v23, %v1045_v15 }
 0x192   :  { %v1159_v53 = vmul.f32 %v2547_v20, %v1047_v11  ;;  %v1373_v28 = vmul.f32 %v2539_v23, %v1047_v11  ;;  %v791_v56 = vpop.f32.mrf.mxu0  ;;  %v1048_v3 = vmax.f32 %v859_v14, 0.0  ;;  %v863_v40 = vadd.f32 %v862_v18, %v2541_v52 }
 0x193   :  { %v1158_v0 = vmul.f32 %v2547_v20, %v1046_v21  ;;  %v1372_v10 = vmul.f32 %v2539_v23, %v1046_v21  ;;  %v1053_v57 = vmax.f32 %v790_v31, 0.0  ;;  %v864_v24 = vpop.f32.mrf.mxu1  ;;  %v1213_v61 = vadd.f32 %v1157_v34, %v1149_v9 }
 0x194   :  { %v1427_v58 = vadd.f32 %v1371_v17, %v1363_v8  ;;  %v793_v47 = vpop.f32.mrf.mxu0  ;;  %v1239_v13 = vadd.f32 %v1159_v53, %v1151_v51  ;;  %v1453_v22 = vadd.f32 %v1373_v28, %v1365_v6  ;;  %v1160_v60 = vmul.f32 %v2547_v20, %v1048_v3  ;;  %v2612_v53 = vpop.permute.xlu0 %1344 }
 0x195   :  { %v1374_v36 = vmul.f32 %v2539_v23, %v1048_v3  ;;  %v866_v25 = vpop.f32.mrf.mxu1  ;;  %v1226_v41 = vadd.f32 %v1158_v0, %v1150_v37  ;;  %v1440_v48 = vadd.f32 %v1372_v10, %v1364_v46  ;;  %v792_v62 = vadd.f32 %v791_v56, %v2541_v52 }
 0x196   :  { %v795_v7 = vpop.f32.mrf.mxu0  ;;  %v1165_v16 = vmul.f32 %v2555_v59, %v1053_v57  ;;  %v1379_v39 = vmul.f32 %v2551_v63, %v1053_v57  ;;  %v865_v1 = vadd.f32 %v864_v24, %v2541_v52  ;;  %v794_v5 = vadd.f32 %v793_v47, %v2535_v44 }
 0x197   :  { %v868_v49 = vpop.f32.mrf.mxu1  ;;  %v1252_v29 = vadd.f32 %v1160_v60, %v1152_v35  ;;  %v1466_v26 = vadd.f32 %v1374_v36, %v1366_v32  ;;  %v1055_v38 = vmax.f32 %v863_v40, 0.0  ;;  %v1054_v55 = vmax.f32 %v792_v62, 0.0  ;;  %v2607_v35 = vpop.permute.xlu1 %709 }
 0x198   :  { %v799_v9 = vpop.f32.mrf.mxu0  ;;  %v1056_v51 = vmax.f32 %v865_v1, 0.0  ;;  %v1061_v8 = vmax.f32 %v794_v5, 0.0  ;;  %v2598_v50 = vadd.f32 %v866_v25, %v2535_v44  ;;  %v2601_v15 = vadd.f32 %v795_v7, %v2535_v44  ;;  %3058 = vst [vmem:[#allocation8_spill] sm:$0xff] %v2607_v35 }
 0x199   :  { %v872_v11 = vpop.f32.mrf.mxu1  ;;  %v1167_v6 = vmul.f32 %v2555_v59, %v1055_v38  ;;  %v1381_v14 = vmul.f32 %v2551_v63, %v1055_v38  ;;  %v1166_v33 = vmul.f32 %v2555_v59, %v1054_v55  ;;  %v1380_v37 = vmul.f32 %v2551_v63, %v1054_v55  ;;  %v2630_v55 = vpop.permute.xlu0 %1348 }
 0x19a   :  { %v801_v21 = vpop.f32.mrf.mxu0  ;;  %v1214_v31 = vadd.f32 %v1213_v61, %v1165_v16  ;;  %v1168_v18 = vmul.f32 %v2555_v59, %v1056_v51  ;;  %v1382_v34 = vmul.f32 %v2551_v63, %v1056_v51  ;;  %v1063_v17 = vmax.f32 %v2598_v50, 0.0  ;;  %3060 = vst [vmem:[#allocation6_spill] sm:$0xff] %v2630_v55 }
 0x19b   :  { %v874_v28 = vpop.f32.mrf.mxu1  ;;  %v1428_v56 = vadd.f32 %v1427_v58, %v1379_v39  ;;  %v1240_v0 = vadd.f32 %v1239_v13, %v1167_v6  ;;  %v1454_v10 = vadd.f32 %v1453_v22, %v1381_v14  ;;  %v1173_v3 = vmul.f32 %v2587_v42, %v1061_v8  ;;  %v2628_v5 = vpop.permute.xlu1 %1352 }
 0x19c   :  { %v803_v57 = vpop.f32.mrf.mxu0  ;;  %v1227_v24 = vadd.f32 %v1226_v41, %v1166_v33  ;;  %v1441_v46 = vadd.f32 %v1440_v48, %v1380_v37  ;;  %v1253_v32 = vadd.f32 %v1252_v29, %v1168_v18  ;;  %v2615_v47 = vadd.f32 %v1466_v26, %v1382_v34  ;;  %3059 = vst [vmem:[#allocation32_spill] sm:$0xff] %v2628_v5 }
 0x19d   :  { %v876_v61 = vpop.f32.mrf.mxu1  ;;  %v1062_v60 = vmax.f32 %v2601_v15, 0.0  ;;  %v869_v36 = vadd.f32 %v868_v49, %v2535_v44  ;;  %v800_v25 = vadd.f32 %v799_v9, %v2543_v45  ;;  %v873_v40 = vadd.f32 %v872_v11, %v2543_v45 }
 0x19e   :  { %v805_v58 = vpop.f32.mrf.mxu0  ;;  %v1175_v13 = vmul.f32 %v2587_v42, %v1063_v17  ;;  %v802_v22 = vadd.f32 %v801_v21, %v2543_v45  ;;  %v875_v41 = vadd.f32 %v874_v28, %v2543_v45  ;;  %v2625_v48 = vadd.f32 %v803_v57, %v2549_v54 }
 0x19f   :  { %v878_v62 = vpop.f32.mrf.mxu1  ;;  %v1174_v7 = vmul.f32 %v2587_v42, %v1062_v60  ;;  %v1064_v16 = vmax.f32 %v869_v36, 0.0  ;;  %v1069_v39 = vmax.f32 %v800_v25, 0.0  ;;  %v1071_v1 = vmax.f32 %v873_v40, 0.0 }
 0x1a0   :  { %v809_v49 = vpop.f32.mrf.mxu0  ;;  %v1215_v29 = vadd.f32 %v1214_v31, %v1173_v3  ;;  %v1070_v26 = vmax.f32 %v802_v22, 0.0  ;;  %v1072_v38 = vmax.f32 %v875_v41, 0.0  ;;  %v1077_v9 = vmax.f32 %v2625_v48, 0.0  ;;  %v2652_v48 = vpop.permute.xlu1 %1136 }
 0x1a1   :  { %v882_v51 = vpop.f32.mrf.mxu1  ;;  %v1176_v50 = vmul.f32 %v2587_v42, %v1064_v16  ;;  %v1181_v15 = vmul.f32 %v2553_v4, %v1069_v39  ;;  %v1183_v11 = vmul.f32 %v2553_v4, %v1071_v1  ;;  %v1387_v6 = vmul.f32 %v2612_v53, %v1061_v8  ;;  %3061 = vst [vmem:[#allocation33_spill] sm:$0xff] %v2652_v48 }
 0x1a2   :  { %v811_v14 = vpop.f32.mrf.mxu0  ;;  %v1241_v33 = vadd.f32 %v1240_v0, %v1175_v13  ;;  %v1228_v37 = vadd.f32 %v1227_v24, %v1174_v7  ;;  %v1182_v21 = vmul.f32 %v2553_v4, %v1070_v26  ;;  %v1184_v31 = vmul.f32 %v2553_v4, %v1072_v38 }
 0x1a3   :  { %v884_v18 = vpop.f32.mrf.mxu1  ;;  %v1254_v34 = vadd.f32 %v1253_v32, %v1176_v50  ;;  %v2639_v28 = vadd.f32 %v1215_v29, %v1181_v15  ;;  %v1395_v3 = vmul.f32 %v2630_v55, %v1069_v39  ;;  %v1403_v57 = vmul.f32 %v2628_v5, %v1077_v9 }
 0x1a4   :  { %v813_v36 = vpop.f32.mrf.mxu0  ;;  %v2643_v25 = vadd.f32 %v1241_v33, %v1183_v11  ;;  %v877_v8 = vadd.f32 %v876_v61, %v2549_v54  ;;  %v1389_v0 = vmul.f32 %v2612_v53, %v1063_v17  ;;  %v1397_v24 = vmul.f32 %v2630_v55, %v1071_v1 }
 0x1a5   :  { %v886_v40 = vpop.f32.mrf.mxu1  ;;  %v2648_v13 = vadd.f32 %v1228_v37, %v1182_v21  ;;  %v1429_v22 = vadd.f32 %v1428_v56, %v1387_v6  ;;  %v806_v32 = vadd.f32 %v805_v58, %v2549_v54  ;;  %v1388_v41 = vmul.f32 %v2612_v53, %v1062_v60 }
 0x1a6   :  { %v815_v7 = vpop.f32.mrf.mxu0  ;;  %v1079_v39 = vmax.f32 %v877_v8, 0.0  ;;  %v1455_v29 = vadd.f32 %v1454_v10, %v1389_v0  ;;  %v1396_v50 = vmul.f32 %v2630_v55, %v1070_v26  ;;  %v879_v61 = vadd.f32 %v878_v62, %v2549_v54  ;;  %v2666_v8 = vpop.permute.xlu0 %1356 }
 0x1a7   :  { %v888_v17 = vpop.f32.mrf.mxu1  ;;  %v1430_v15 = vadd.f32 %v1429_v22, %v1395_v3  ;;  %v1078_v1 = vmax.f32 %v806_v32, 0.0  ;;  %v1442_v11 = vadd.f32 %v1441_v46, %v1388_v41  ;;  %v1390_v33 = vmul.f32 %v2612_v53, %v1064_v16  ;;  %3062 = vst [vmem:[#allocation9_spill] sm:$0xff] %v2666_v8  ;;  %v2678_v41 = vpop.permute.xlu1 %1141 }
 0x1a8   :  { %v2657_v56 = vpop.f32.mrf.mxu0  ;;  %v2659_v58 = vadd.f32 %v1254_v34, %v1184_v31  ;;  %v1405_v60 = vmul.f32 %v2628_v5, %v1079_v39  ;;  %v1456_v6 = vadd.f32 %v1455_v29, %v1397_v24  ;;  %v1080_v37 = vmax.f32 %v879_v61, 0.0  ;;  %3063 = vst [vmem:[#allocation7_spill] sm:$0xff] %v2678_v41 }
 0x1a9   :  { %v2662_v21 = vpop.f32.mrf.mxu1  ;;  %v1431_v10 = vadd.f32 %v1430_v15, %v1403_v57  ;;  %v1404_v26 = vmul.f32 %v2628_v5, %v1078_v1  ;;  %v1443_v62 = vadd.f32 %v1442_v11, %v1396_v50  ;;  %v1398_v3 = vmul.f32 %v2630_v55, %v1072_v38 }
 0x1aa   :  { %v2668_v46 = vpop.f32.mrf.mxu0  ;;  %v1457_v16 = vadd.f32 %v1456_v6, %v1405_v60  ;;  %v1406_v31 = vmul.f32 %v2628_v5, %v1080_v37  ;;  %v1468_v34 = vadd.f32 %v2615_v47, %v1390_v33  ;;  %v1189_v0 = vmul.f32 %v2652_v48, %v1077_v9 }
 0x1ab   :  { %v2673_v24 = vpop.f32.mrf.mxu1  ;;  %v1444_v22 = vadd.f32 %v1443_v62, %v1404_v26  ;;  %v1190_v57 = vmul.f32 %v2652_v48, %v1078_v1  ;;  %v1191_v32 = vmul.f32 %v2652_v48, %v1079_v39  ;;  %v810_v38 = vadd.f32 %v809_v49, %v2563_v43 }
 0x1ac   :  { %v2680_v29 = vpop.f32.mrf.mxu0  ;;  %v883_v50 = vadd.f32 %v882_v51, %v2563_v43  ;;  %v812_v61 = vadd.f32 %v811_v14, %v2563_v43  ;;  %v885_v47 = vadd.f32 %v884_v18, %v2563_v43  ;;  %v814_v9 = vadd.f32 %v813_v36, %v2607_v35 }
 0x1ad   :  { %v2686_v15 = vpop.f32.mrf.mxu1  ;;  %v1469_v11 = vadd.f32 %v1468_v34, %v1398_v3  ;;  %v1085_v1 = vmax.f32 %v810_v38, 0.0  ;;  %v887_v39 = vadd.f32 %v886_v40, %v2607_v35  ;;  %v816_v49 = vadd.f32 %v815_v7, %v2607_v35  ;;  %v2696_v3 = vpop.permute.xlu0 %1146 }
 0x1ae   :  { %v2690_v33 = vpop.f32.mrf.mxu0  ;;  %v1087_v60 = vmax.f32 %v883_v50, 0.0  ;;  %v1086_v6 = vmax.f32 %v812_v61, 0.0  ;;  %v1088_v26 = vmax.f32 %v885_v47, 0.0  ;;  %v1093_v51 = vmax.f32 %v814_v9, 0.0 }
 0x1af   :  { %v2692_v62 = vpop.f32.mrf.mxu1  ;;  %v1192_v14 = vmul.f32 %v2652_v48, %v1080_v37  ;;  %v1411_v18 = vmul.f32 %v2666_v8, %v1085_v1  ;;  %v1095_v36 = vmax.f32 %v887_v39, 0.0  ;;  %v1094_v19 = vmax.f32 %v816_v49, 0.0  ;;  %v2708_v49 = vpop.permute.xlu1 %1360 }
 0x1b0   :  { %v2698_v34 = vpop.f32.mrf.mxu0  ;;  %v1470_v40 = vadd.f32 %v1469_v11, %v1406_v31  ;;  %v1412_v7 = vmul.f32 %v2666_v8, %v1086_v6  ;;  %v1413_v38 = vmul.f32 %v2666_v8, %v1087_v60  ;;  %v1197_v50 = vmul.f32 %v2678_v41, %v1085_v1 }
 0x1b1   :  { %v2703_v61 = vpop.f32.mrf.mxu1  ;;  %v1414_v47 = vmul.f32 %v2666_v8, %v1088_v26  ;;  %v1432_v37 = vadd.f32 %v1431_v10, %v1411_v18  ;;  %v1198_v9 = vmul.f32 %v2678_v41, %v1086_v6  ;;  %v889_v39 = vadd.f32 %v888_v17, %v2607_v35 }
 0x1b2   :  { %v1445_v5 = vadd.f32 %v1444_v22, %v1412_v7  ;;  %v1199_v31 = vmul.f32 %v2678_v41, %v1087_v60  ;;  %v1200_v11 = vmul.f32 %v2678_v41, %v1088_v26  ;;  %v1205_v48 = vmul.f32 %v2696_v3, %v1093_v51  ;;  %v937_v18 = vpop.f32.mrf.mxu0 }
 0x1b3   :  { %v1096_v43 = vmax.f32 %v889_v39, 0.0  ;;  %v1206_v1 = vmul.f32 %v2696_v3, %v1094_v19  ;;  %v1207_v55 = vmul.f32 %v2696_v3, %v1095_v36  ;;  %v1217_v10 = vadd.f32 %v2639_v28, %v1189_v0  ;;  %v1010_v6 = vpop.f32.mrf.mxu1 }
 0x1b4   :  { %v1230_v17 = vadd.f32 %v2648_v13, %v1190_v57  ;;  %v1243_v8 = vadd.f32 %v2643_v25, %v1191_v32  ;;  %v1256_v22 = vadd.f32 %v2659_v58, %v1192_v14  ;;  %v1419_v60 = vmul.f32 %v2708_v49, %v1093_v51 }
 0x1b5   :  { %v2720_v26 = vadd.f32 %v1457_v16, %v1413_v38  ;;  %v1208_v7 = vmul.f32 %v2696_v3, %v1096_v43  ;;  %v1218_v39 = vadd.f32 %v1217_v10, %v1197_v50  ;;  %v1420_v41 = vmul.f32 %v2708_v49, %v1094_v19  ;;  %v2736_v16 = vpop.f32.mrf.mxu0  ;;  %v2738_v57 = vpop.f32.mrf.mxu1 }
 0x1b6   :  { %v2724_v35 = vadd.f32 %v1470_v40, %v1414_v47  ;;  %v1231_v28 = vadd.f32 %v1230_v17, %v1198_v9  ;;  %v1244_v0 = vadd.f32 %v1243_v8, %v1199_v31  ;;  %v1257_v4 = vadd.f32 %v1256_v22, %v1200_v11 }
 0x1b7   :  { %v2726_v54 = vadd.f32 %v1218_v39, %v1205_v48  ;;  %v2729_v25 = vmul.f32 %v2708_v49, %v1095_v36  ;;  %v2732_v13 = vmul.f32 %v2708_v49, %v1096_v43  ;;  %v2734_v58 = vadd.f32 %v1432_v37, %v1419_v60  ;;  %v941_v47 = vpop.f32.mrf.mxu0 }
 0x1b8   :  { %v2740_v19 = vadd.f32 %v1231_v28, %v1206_v1  ;;  %v2742_v32 = vadd.f32 %v1244_v0, %v1207_v55  ;;  %v2744_v8 = vadd.f32 %v1257_v4, %v1208_v7  ;;  %v2746_v48 = vadd.f32 %v1445_v5, %v1420_v41 }
 0x1b9   :  { %v1220_v51 = vrot.slane %v2726_v54, 4  ;;  %v926_v43 = vadd.f32 %v2657_v56, %v2537_v30  ;;  %v999_v14 = vadd.f32 %v2662_v21, %v2537_v30  ;;  %v928_v36 = vadd.f32 %v2668_v46, %v2537_v30  ;;  %v1014_v21 = vpop.f32.mrf.mxu1 }
 0x1ba   :  { %v1233_v40 = vrot.slane %v2740_v19, 4  ;;  %v1001_v5 = vadd.f32 %v2673_v24, %v2537_v30  ;;  %v930_v56 = vadd.f32 %v2680_v29, %v2533_v27  ;;  %v1003_v46 = vadd.f32 %v2686_v15, %v2533_v27 }
 0x1bb   :  { %v1041_v41 = vmax.f32 %v926_v43, 0.0  ;;  %v1043_v38 = vmax.f32 %v999_v14, 0.0  ;;  %v1042_v50 = vmax.f32 %v928_v36, 0.0  ;;  %v932_v9 = vadd.f32 %v2690_v33, %v2533_v27  ;;  %v1018_v7 = vpop.f32.mrf.mxu1 }
 0x1bc   :  { %v1044_v37 = vmax.f32 %v1001_v5, 0.0  ;;  %v1005_v31 = vadd.f32 %v2692_v62, %v2533_v27  ;;  %v1049_v33 = vmax.f32 %v930_v56, 0.0  ;;  %v1051_v22 = vmax.f32 %v1003_v46, 0.0  ;;  %v945_v62 = vpop.f32.mrf.mxu0 }
 0x1bd   :  { %v1153_v30 = vmul.f32 %v2545_v12, %v1041_v41  ;;  %v1367_v24 = vmul.f32 %v2561_v2, %v1041_v41  ;;  %v1155_v11 = vmul.f32 %v2545_v12, %v1043_v38  ;;  %v1369_v29 = vmul.f32 %v2561_v2, %v1043_v38  ;;  %v1020_v56 = vpop.f32.mrf.mxu1 }
 0x1be   :  { %v1154_v1 = vmul.f32 %v2545_v12, %v1042_v50  ;;  %v1368_v10 = vmul.f32 %v2561_v2, %v1042_v50  ;;  %v1156_v15 = vmul.f32 %v2545_v12, %v1044_v37  ;;  %v1370_v17 = vmul.f32 %v2561_v2, %v1044_v37 }
 0x1bf   :  { %v1050_v60 = vmax.f32 %v932_v9, 0.0  ;;  %v1052_v27 = vmax.f32 %v1005_v31, 0.0  ;;  %v936_v39 = vadd.f32 %v2698_v34, %v2541_v52  ;;  %v1009_v28 = vadd.f32 %v2703_v61, %v2541_v52 }
 0x1c0   :  { %v938_v0 = vadd.f32 %v937_v18, %v2541_v52  ;;  %v1011_v43 = vadd.f32 %v1010_v6, %v2541_v52  ;;  %v1161_v12 = vmul.f32 %v2547_v20, %v1049_v33  ;;  %v1375_v2 = vmul.f32 %v2539_v23, %v1049_v33  ;;  %v947_v6 = vpop.f32.mrf.mxu0 }
 0x1c1   :  { %v1163_v14 = vmul.f32 %v2547_v20, %v1051_v22  ;;  %v1377_v36 = vmul.f32 %v2539_v23, %v1051_v22  ;;  %v1162_v5 = vmul.f32 %v2547_v20, %v1050_v60  ;;  %v1376_v41 = vmul.f32 %v2539_v23, %v1050_v60 }
 0x1c2   :  { %v1164_v34 = vmul.f32 %v2547_v20, %v1052_v27  ;;  %v1378_v61 = vmul.f32 %v2539_v23, %v1052_v27  ;;  %v1265_v38 = vadd.f32 %v1161_v12, %v1153_v30  ;;  %v1479_v18 = vadd.f32 %v1375_v2, %v1367_v24 }
 0x1c3   :  { %v1291_v50 = vadd.f32 %v1163_v14, %v1155_v11  ;;  %v1505_v52 = vadd.f32 %v1377_v36, %v1369_v29  ;;  %v1278_v37 = vadd.f32 %v1162_v5, %v1154_v1  ;;  %v1492_v46 = vadd.f32 %v1376_v41, %v1368_v10  ;;  %v949_v10 = vpop.f32.mrf.mxu0 }
 0x1c4   :  { %v1304_v9 = vadd.f32 %v1164_v34, %v1156_v15  ;;  %v1518_v31 = vadd.f32 %v1378_v61, %v1370_v17  ;;  %v1057_v33 = vmax.f32 %v936_v39, 0.0  ;;  %v1059_v22 = vmax.f32 %v1009_v28, 0.0  ;;  %v1022_v15 = vpop.f32.mrf.mxu1 }
 0x1c5   :  { %v1058_v4 = vmax.f32 %v938_v0, 0.0  ;;  %v1060_v55 = vmax.f32 %v1011_v43, 0.0  ;;  %v940_v60 = vadd.f32 %v2736_v16, %v2535_v44  ;;  %v1013_v23 = vadd.f32 %v2738_v57, %v2535_v44  ;;  %v951_v41 = vpop.f32.mrf.mxu0 }
 0x1c6   :  { %v942_v20 = vadd.f32 %v941_v47, %v2535_v44  ;;  %v1015_v30 = vadd.f32 %v1014_v21, %v2535_v44  ;;  %v1169_v24 = vmul.f32 %v2555_v59, %v1057_v33  ;;  %v1383_v11 = vmul.f32 %v2551_v63, %v1057_v33  ;;  %v1024_v34 = vpop.f32.mrf.mxu1 }
 0x1c7   :  { %v1171_v29 = vmul.f32 %v2555_v59, %v1059_v22  ;;  %v1385_v1 = vmul.f32 %v2551_v63, %v1059_v22  ;;  %v1170_v17 = vmul.f32 %v2555_v59, %v1058_v4  ;;  %v1384_v16 = vmul.f32 %v2551_v63, %v1058_v4 }
 0x1c8   :  { %v1172_v57 = vmul.f32 %v2555_v59, %v1060_v55  ;;  %v1386_v47 = vmul.f32 %v2551_v63, %v1060_v55  ;;  %v1266_v27 = vadd.f32 %v1265_v38, %v1169_v24  ;;  %v1480_v44 = vadd.f32 %v1479_v18, %v1383_v11 }
 0x1c9   :  { %v1292_v21 = vadd.f32 %v1291_v50, %v1171_v29  ;;  %v1506_v39 = vadd.f32 %v1505_v52, %v1385_v1  ;;  %v1279_v28 = vadd.f32 %v1278_v37, %v1170_v17  ;;  %v1493_v0 = vadd.f32 %v1492_v46, %v1384_v16  ;;  %v3064_v29 = vld [vmem:[#allocation13_spill] sm:$0xff]  ;;  %v3065_v16 = vld [vmem:[#allocation20_spill] sm:$0xff] }
 0x1ca   :  { %v1305_v43 = vadd.f32 %v1304_v9, %v1172_v57  ;;  %v1519_v12 = vadd.f32 %v1518_v31, %v1386_v47  ;;  %v1065_v2 = vmax.f32 %v940_v60, 0.0  ;;  %v1067_v14 = vmax.f32 %v1013_v23, 0.0  ;;  %v1028_v31 = vpop.f32.mrf.mxu1  ;;  %v3066_v47 = vld [vmem:[#allocation6_spill] sm:$0xff] }
 0x1cb   :  { %v1066_v36 = vmax.f32 %v942_v20, 0.0  ;;  %v1068_v5 = vmax.f32 %v1015_v30, 0.0  ;;  %v946_v4 = vadd.f32 %v945_v62, %v2543_v45  ;;  %v1019_v59 = vadd.f32 %v1018_v7, %v2543_v45 }
 0x1cc   :  { %v948_v63 = vadd.f32 %v947_v6, %v2543_v45  ;;  %v1021_v55 = vadd.f32 %v1020_v56, %v2543_v45  ;;  %v1177_v61 = vmul.f32 %v2587_v42, %v1065_v2  ;;  %v1391_v38 = vmul.f32 %v2612_v53, %v1065_v2  ;;  %v955_v56 = vpop.f32.mrf.mxu0 }
 0x1cd   :  { %v1179_v18 = vmul.f32 %v2587_v42, %v1067_v14  ;;  %v1393_v50 = vmul.f32 %v2612_v53, %v1067_v14  ;;  %v1178_v52 = vmul.f32 %v2587_v42, %v1066_v36  ;;  %v1392_v37 = vmul.f32 %v2612_v53, %v1066_v36 }
 0x1ce   :  { %v1180_v62 = vmul.f32 %v2587_v42, %v1068_v5  ;;  %v1394_v7 = vmul.f32 %v2612_v53, %v1068_v5  ;;  %v1267_v46 = vadd.f32 %v1266_v27, %v1177_v61  ;;  %v1481_v6 = vadd.f32 %v1480_v44, %v1391_v38 }
 0x1cf   :  { %v1293_v9 = vadd.f32 %v1292_v21, %v1179_v18  ;;  %v1507_v45 = vadd.f32 %v1506_v39, %v1393_v50  ;;  %v1280_v33 = vadd.f32 %v1279_v28, %v1178_v52  ;;  %v1494_v22 = vadd.f32 %v1493_v0, %v1392_v37  ;;  %v957_v39 = vpop.f32.mrf.mxu0  ;;  %v1030_v28 = vpop.f32.mrf.mxu1  ;;  %v3067_v50 = vld [vmem:[#allocation12_spill] sm:$0xff] }
 0x1d0   :  { %v1306_v60 = vadd.f32 %v1305_v43, %v1180_v62  ;;  %v1520_v23 = vadd.f32 %v1519_v12, %v1394_v7  ;;  %v1073_v20 = vmax.f32 %v946_v4, 0.0  ;;  %v1075_v30 = vmax.f32 %v1019_v59, 0.0 }
 0x1d1   :  { %v1074_v24 = vmax.f32 %v948_v63, 0.0  ;;  %v1076_v11 = vmax.f32 %v1021_v55, 0.0  ;;  %v950_v1 = vadd.f32 %v949_v10, %v3064_v29  ;;  %v1023_v42 = vadd.f32 %v1022_v15, %v3064_v29  ;;  %v959_v38 = vpop.f32.mrf.mxu0  ;;  %v1032_v18 = vpop.f32.mrf.mxu1 }
 0x1d2   :  { %v952_v53 = vadd.f32 %v951_v41, %v3064_v29  ;;  %v1025_v17 = vadd.f32 %v1024_v34, %v3064_v29  ;;  %v1185_v57 = vmul.f32 %v3065_v16, %v1073_v20  ;;  %v1399_v27 = vmul.f32 %v3066_v47, %v1073_v20 }
 0x1d3   :  { %v1187_v44 = vmul.f32 %v3065_v16, %v1075_v30  ;;  %v1401_v21 = vmul.f32 %v3066_v47, %v1075_v30  ;;  %v1186_v0 = vmul.f32 %v3065_v16, %v1074_v24  ;;  %v1400_v10 = vmul.f32 %v3066_v47, %v1074_v24  ;;  %v961_v29 = vpop.f32.mrf.mxu0 }
 0x1d4   :  { %v1188_v15 = vmul.f32 %v3065_v16, %v1076_v11  ;;  %v1402_v43 = vmul.f32 %v3066_v47, %v1076_v11  ;;  %v1268_v12 = vadd.f32 %v1267_v46, %v1185_v57  ;;  %v1482_v2 = vadd.f32 %v1481_v6, %v1399_v27  ;;  %v3068_v46 = vld [vmem:[#allocation33_spill] sm:$0xff] }
 0x1d5   :  { %v1294_v14 = vadd.f32 %v1293_v9, %v1187_v44  ;;  %v1508_v36 = vadd.f32 %v1507_v45, %v1401_v21  ;;  %v1281_v5 = vadd.f32 %v1280_v33, %v1186_v0  ;;  %v1495_v41 = vadd.f32 %v1494_v22, %v1400_v10  ;;  %v3069_v9 = vld [vmem:[#allocation32_spill] sm:$0xff] }
 0x1d6   :  { %v1307_v34 = vadd.f32 %v1306_v60, %v1188_v15  ;;  %v1521_v4 = vadd.f32 %v1520_v23, %v1402_v43  ;;  %v1081_v59 = vmax.f32 %v950_v1, 0.0  ;;  %v1083_v63 = vmax.f32 %v1023_v42, 0.0  ;;  %v1034_v1 = vpop.f32.mrf.mxu1  ;;  %v3070_v21 = vld [vmem:[#allocation8_spill] sm:$0xff]  ;;  %v3071_v15 = vld [vmem:[#allocation7_spill] sm:$0xff] }
 0x1d7   :  { %v1082_v55 = vmax.f32 %v952_v53, 0.0  ;;  %v1084_v61 = vmax.f32 %v1025_v17, 0.0  ;;  %v956_v52 = vadd.f32 %v955_v56, %v3067_v50  ;;  %v1029_v37 = vadd.f32 %v1028_v31, %v3067_v50 }
 0x1d8   :  { %v958_v62 = vadd.f32 %v957_v39, %v3067_v50  ;;  %v1031_v7 = vadd.f32 %v1030_v28, %v3067_v50  ;;  %v1193_v6 = vmul.f32 %v3068_v46, %v1081_v59  ;;  %v1407_v45 = vmul.f32 %v3069_v9, %v1081_v59 }
 0x1d9   :  { %v1195_v33 = vmul.f32 %v3068_v46, %v1083_v63  ;;  %v1409_v22 = vmul.f32 %v3069_v9, %v1083_v63  ;;  %v1194_v60 = vmul.f32 %v3068_v46, %v1082_v55  ;;  %v1408_v23 = vmul.f32 %v3069_v9, %v1082_v55 }
 0x1da   :  { %v1196_v56 = vmul.f32 %v3068_v46, %v1084_v61  ;;  %v1410_v31 = vmul.f32 %v3069_v9, %v1084_v61  ;;  %v1269_v20 = vadd.f32 %v1268_v12, %v1193_v6  ;;  %v1483_v30 = vadd.f32 %v1482_v2, %v1407_v45  ;;  %v3072_v12 = vld [vmem:[#allocation9_spill] sm:$0xff] }
 0x1db   :  { %v1295_v24 = vadd.f32 %v1294_v14, %v1195_v33  ;;  %v1509_v11 = vadd.f32 %v1508_v36, %v1409_v22  ;;  %v1282_v42 = vadd.f32 %v1281_v5, %v1194_v60  ;;  %v1496_v53 = vadd.f32 %v1495_v41, %v1408_v23 }
 0x1dc   :  { %v1308_v17 = vadd.f32 %v1307_v34, %v1196_v56  ;;  %v1522_v16 = vadd.f32 %v1521_v4, %v1410_v31  ;;  %v1089_v57 = vmax.f32 %v956_v52, 0.0  ;;  %v1091_v47 = vmax.f32 %v1029_v37, 0.0 }
 0x1dd   :  { %v1090_v27 = vmax.f32 %v958_v62, 0.0  ;;  %v1092_v44 = vmax.f32 %v1031_v7, 0.0  ;;  %v960_v39 = vadd.f32 %v959_v38, %v3070_v21  ;;  %v1033_v28 = vadd.f32 %v1032_v18, %v3070_v21 }
 0x1de   :  { %v962_v0 = vadd.f32 %v961_v29, %v3070_v21  ;;  %v1035_v10 = vadd.f32 %v1034_v1, %v3070_v21  ;;  %v1201_v43 = vmul.f32 %v3071_v15, %v1089_v57  ;;  %v1415_v2 = vmul.f32 %v3072_v12, %v1089_v57 }
 0x1df   :  { %v1203_v14 = vmul.f32 %v3071_v15, %v1091_v47  ;;  %v1417_v36 = vmul.f32 %v3072_v12, %v1091_v47  ;;  %v1202_v5 = vmul.f32 %v3071_v15, %v1090_v27  ;;  %v1416_v41 = vmul.f32 %v3072_v12, %v1090_v27 }
 0x1e0   :  { %v1204_v34 = vmul.f32 %v3071_v15, %v1092_v44  ;;  %v1418_v4 = vmul.f32 %v3072_v12, %v1092_v44  ;;  %v1270_v59 = vadd.f32 %v1269_v20, %v1201_v43  ;;  %v1484_v63 = vadd.f32 %v1483_v30, %v1415_v2 }
 0x1e1   :  { %v1296_v55 = vadd.f32 %v1295_v24, %v1203_v14  ;;  %v1510_v61 = vadd.f32 %v1509_v11, %v1417_v36  ;;  %v1283_v38 = vadd.f32 %v1282_v42, %v1202_v5  ;;  %v1497_v18 = vadd.f32 %v1496_v53, %v1416_v41  ;;  %v2880_v5 = vpop.permute.xlu1 %1534 }
 0x1e2   :  { %v1309_v50 = vadd.f32 %v1308_v17, %v1204_v34  ;;  %v1523_v52 = vadd.f32 %v1522_v16, %v1418_v4  ;;  %v1097_v37 = vmax.f32 %v960_v39, 0.0  ;;  %v1099_v62 = vmax.f32 %v1033_v28, 0.0 }
 0x1e3   :  { %v1098_v7 = vmax.f32 %v962_v0, 0.0  ;;  %v1100_v46 = vmax.f32 %v1035_v10, 0.0  ;;  %v2855_v6 = vadd.f32 %v1220_v51, %v2726_v54  ;;  %v2860_v9 = vadd.f32 %v1233_v40, %v2740_v19 }
 0x1e4   :  { %v3073_v45 = vrot.slane %v2742_v32, 4  ;;  %v3074_v22 = vrot.slane %v2744_v8, 4  ;;  %v1209_v23 = vmul.f32 %v2696_v3, %v1097_v37  ;;  %v1423_v54 = vmul.f32 %v2708_v49, %v1097_v37 }
 0x1e5   :  { %v1211_v51 = vmul.f32 %v2696_v3, %v1099_v62  ;;  %v1425_v56 = vmul.f32 %v2708_v49, %v1099_v62  ;;  %v1210_v19 = vmul.f32 %v2696_v3, %v1098_v7  ;;  %v1424_v40 = vmul.f32 %v2708_v49, %v1098_v7 }
 0x1e6   :  { %v2865_v33 = vadd.f32 %v3073_v45, %v2742_v32  ;;  %v2870_v60 = vadd.f32 %v3074_v22, %v2744_v8  ;;  %v1212_v32 = vmul.f32 %v2696_v3, %v1100_v46  ;;  %v1426_v31 = vmul.f32 %v2708_v49, %v1100_v46 }
 0x1e7   :  { %v1271_v20 = vadd.f32 %v1270_v59, %v1209_v23  ;;  %v1485_v30 = vadd.f32 %v1484_v63, %v1423_v54  ;;  %v1297_v8 = vadd.f32 %v1296_v55, %v1211_v51  ;;  %v1511_v24 = vadd.f32 %v1510_v61, %v1425_v56 }
 0x1e8   :  { %v1284_v11 = vadd.f32 %v1283_v38, %v1210_v19  ;;  %v1498_v29 = vadd.f32 %v1497_v18, %v1424_v40  ;;  %v1310_v1 = vadd.f32 %v1309_v50, %v1212_v32  ;;  %v1524_v42 = vadd.f32 %v1523_v52, %v1426_v31 }
 0x1e9   :  { %v1272_v53 = vrot.slane %v1271_v20, 4  ;;  %v1486_v17 = vrot.slane %v1485_v30, 4  ;;  %v1298_v16 = vrot.slane %v1297_v8, 4  ;;  %v1512_v57 = vrot.slane %v1511_v24, 4 }
 0x1ea   :  { %v1285_v47 = vrot.slane %v1284_v11, 4  ;;  %v1499_v27 = vrot.slane %v1498_v29, 4  ;;  %v1311_v44 = vrot.slane %v1310_v1, 4  ;;  %v1525_v21 = vrot.slane %v1524_v42, 4 }
 0x1eb   :  { %v1273_v39 = vadd.f32 %v1272_v53, %v1271_v20  ;;  %v1487_v3 = vadd.f32 %v1486_v17, %v1485_v30  ;;  %v1299_v28 = vadd.f32 %v1298_v16, %v1297_v8  ;;  %v1513_v49 = vadd.f32 %v1512_v57, %v1511_v24  ;;  %v2886_v30 = vpop.permute.xlu1 %1320 }
 0x1ec   :  { %v1286_v0 = vadd.f32 %v1285_v47, %v1284_v11  ;;  %v1500_v10 = vadd.f32 %v1499_v27, %v1498_v29  ;;  %v1312_v15 = vadd.f32 %v1311_v44, %v1310_v1  ;;  %v1526_v43 = vadd.f32 %v1525_v21, %v1524_v42 }
 0x1ed   :  { %v1274_v12 = vrot.slane %v1273_v39, 2  ;;  %v1488_v2 = vrot.slane %v1487_v3, 2  ;;  %v1300_v14 = vrot.slane %v1299_v28, 2  ;;  %v1514_v36 = vrot.slane %v1513_v49, 2 }
 0x1ee   :  { %v1287_v41 = vrot.slane %v1286_v0, 2  ;;  %v1501_v34 = vrot.slane %v1500_v10, 2  ;;  %v1313_v4 = vrot.slane %v1312_v15, 2  ;;  %v1527_v59 = vrot.slane %v1526_v43, 2 }
 0x1ef   :  { %v1275_v63 = vadd.f32 %v1274_v12, %v1273_v39  ;;  %v1489_v55 = vadd.f32 %v1488_v2, %v1487_v3  ;;  %v1301_v61 = vadd.f32 %v1300_v14, %v1299_v28  ;;  %v1515_v38 = vadd.f32 %v1514_v36, %v1513_v49 }
 0x1f0   :  { %v1288_v18 = vadd.f32 %v1287_v41, %v1286_v0  ;;  %v1502_v50 = vadd.f32 %v1501_v34, %v1500_v10  ;;  %v1314_v52 = vadd.f32 %v1313_v4, %v1312_v15  ;;  %v1528_v37 = vadd.f32 %v1527_v59, %v1526_v43 }
 0x1f1   :  { %v1276_v62 = vrot.slane %v1275_v63, 1  ;;  %v1490_v7 = vrot.slane %v1489_v55, 1  ;;  %v1302_v46 = vrot.slane %v1301_v61, 1  ;;  %v1516_v45 = vrot.slane %v1515_v38, 1 }
 0x1f2   :  { %v1289_v22 = vrot.slane %v1288_v18, 1  ;;  %v1503_v23 = vrot.slane %v1502_v50, 1  ;;  %v1315_v54 = vrot.slane %v1314_v52, 1  ;;  %v1529_v51 = vrot.slane %v1528_v37, 1 }
 0x1f3   :  { %v1277_v56 = vadd.f32 %v1276_v62, %v1275_v63  ;;  %v1491_v19 = vadd.f32 %v1490_v7, %v1489_v55  ;;  %v1303_v40 = vadd.f32 %v1302_v46, %v1301_v61  ;;  %v1517_v32 = vadd.f32 %v1516_v45, %v1515_v38 }
 0x1f4   :  { %v1459_v31 = vadd.f32 %v2720_v26, %v2729_v25  ;;  %v1472_v20 = vadd.f32 %v2724_v35, %v2732_v13  ;;  %v1290_v8 = vadd.f32 %v1289_v22, %v1288_v18  ;;  %v1504_v24 = vadd.f32 %v1503_v23, %v1502_v50 }
 0x1f5   :  { %v1327_v11 = vadd.f32 %v2886_v30, %v1277_v56  ;;  %v1541_v29 = vadd.f32 %v2880_v5, %v1491_v19  ;;  %v1316_v1 = vadd.f32 %v1315_v54, %v1314_v52  ;;  %v1530_v42 = vadd.f32 %v1529_v51, %v1528_v37 }
 0x1f6   :  { %v1329_v53 = vadd.f32 %v2886_v30, %v1303_v40  ;;  %v1543_v17 = vadd.f32 %v2880_v5, %v1517_v32  ;;  %v1328_v16 = vadd.f32 %v2886_v30, %v1290_v8  ;;  %v1542_v26 = vadd.f32 %v2880_v5, %v1504_v24 }
 0x1f7   :  { %v1222_v35 = vrot.slane %v2855_v6, 2  ;;  %v1235_v25 = vrot.slane %v2860_v9, 2  ;;  %v1248_v13 = vrot.slane %v2865_v33, 2  ;;  %v1261_v57 = vrot.slane %v2870_v60, 2 }
 0x1f8   :  { %v1434_v47 = vrot.slane %v2734_v58, 4  ;;  %v1447_v27 = vrot.slane %v2746_v48, 4  ;;  %v1460_v44 = vrot.slane %v1459_v31, 4  ;;  %v1473_v21 = vrot.slane %v1472_v20, 4 }
 0x1f9   :  { %v1223_v39 = vadd.f32 %v1222_v35, %v2855_v6  ;;  %v1236_v3 = vadd.f32 %v1235_v25, %v2860_v9  ;;  %v1249_v28 = vadd.f32 %v1248_v13, %v2865_v33  ;;  %v1262_v49 = vadd.f32 %v1261_v57, %v2870_v60  ;;  %v3075_v13 = vld [vmem:[#allocation35_spill] sm:$0xff] }
 0x1fa   :  { %v1435_v0 = vadd.f32 %v1434_v47, %v2734_v58  ;;  %v1448_v10 = vadd.f32 %v1447_v27, %v2746_v48  ;;  %v1461_v15 = vadd.f32 %v1460_v44, %v1459_v31  ;;  %v1474_v43 = vadd.f32 %v1473_v21, %v1472_v20 }
 0x1fb   :  { %v1224_v12 = vrot.slane %v1223_v39, 1  ;;  %v1237_v2 = vrot.slane %v1236_v3, 1  ;;  %v1250_v14 = vrot.slane %v1249_v28, 1  ;;  %v1263_v36 = vrot.slane %v1262_v49, 1 }
 0x1fc   :  { %v1436_v41 = vrot.slane %v1435_v0, 2  ;;  %v1449_v34 = vrot.slane %v1448_v10, 2  ;;  %v1462_v6 = vrot.slane %v1461_v15, 2  ;;  %v1475_v4 = vrot.slane %v1474_v43, 2 }
 0x1fd   :  { %v1330_v9 = vadd.f32 %v2886_v30, %v1316_v1  ;;  %v1544_v33 = vadd.f32 %v2880_v5, %v1530_v42  ;;  %v1225_v60 = vadd.f32 %v1224_v12, %v1223_v39  ;;  %v1238_v59 = vadd.f32 %v1237_v2, %v1236_v3 }
 0x1fe   :  { %v1437_v58 = vadd.f32 %v1436_v41, %v1435_v0  ;;  %v1450_v63 = vadd.f32 %v1449_v34, %v1448_v10  ;;  %v1463_v48 = vadd.f32 %v1462_v6, %v1461_v15  ;;  %v1476_v55 = vadd.f32 %v1475_v4, %v1474_v43 }
 0x1ff   :  { %v1251_v61 = vadd.f32 %v1250_v14, %v1249_v28  ;;  %v1264_v38 = vadd.f32 %v1263_v36, %v1262_v49  ;;  %v1323_v18 = vadd.f32 %v2886_v30, %v1225_v60  ;;  %v1324_v50 = vadd.f32 %v2886_v30, %v1238_v59 }
 0x200   :  { %v1438_v52 = vrot.slane %v1437_v58, 1  ;;  %v1451_v37 = vrot.slane %v1450_v63, 1  ;;  %v1464_v62 = vrot.slane %v1463_v48, 1  ;;  %v1477_v7 = vrot.slane %v1476_v55, 1 }
 0x201   :  { %v1557_v46 = vrot.slane %v1541_v29, 7  ;;  %v1558_v45 = vrot.slane %v1542_v26, 7  ;;  %v1559_v22 = vrot.slane %v1543_v17, 7  ;;  %v1560_v23 = vrot.slane %v1544_v33, 7 }
 0x202   :  { %v1439_v54 = vadd.f32 %v1438_v52, %v1437_v58  ;;  %v1452_v51 = vadd.f32 %v1451_v37, %v1450_v63  ;;  %v1465_v56 = vadd.f32 %v1464_v62, %v1463_v48  ;;  %v1478_v19 = vadd.f32 %v1477_v7, %v1476_v55 }
 0x203   :  { %v1574_v40 = vsel %vm1569_vm1, %v1327_v11, %v1557_v46  ;;  %v1575_v32 = vsel %vm1569_vm1, %v1328_v16, %v1558_v45  ;;  %v1576_v31 = vsel %vm1569_vm1, %v1329_v53, %v1559_v22  ;;  %v1577_v20 = vsel %vm1569_vm1, %v1330_v9, %v1560_v23 }
 0x204   :  { %v1537_v8 = vadd.f32 %v2880_v5, %v1439_v54  ;;  %v1538_v24 = vadd.f32 %v2880_v5, %v1452_v51  ;;  %v1539_v29 = vadd.f32 %v2880_v5, %v1465_v56  ;;  %v1540_v1 = vadd.f32 %v2880_v5, %v1478_v19 }
 0x205   :  { %v1325_v42 = vadd.f32 %v2886_v30, %v1251_v61  ;;  %v1326_v17 = vadd.f32 %v2886_v30, %v1264_v38  ;;  %v1603_v26 = vcombine.low %v1574_v40, %v1575_v32  ;;  %v1604_v11 = vcombine.low %v1576_v31, %v1577_v20 }
 0x206   :  { %v1553_v35 = vrot.slane %v1537_v8, 7  ;;  %v1554_v16 = vrot.slane %v1538_v24, 7  ;;  %v1555_v25 = vrot.slane %v1539_v29, 7  ;;  %v1556_v53 = vrot.slane %v1540_v1, 7 }
 0x207   :  { %v1611_v57 = vrot.slane %v1603_v26, %v3075_v13  ;;  %v1618_v47 = vrot.slane %v1604_v11, %v3075_v13 }
 0x208   :  { %v1570_v27 = vsel %vm1569_vm1, %v1323_v18, %v1553_v35  ;;  %v1571_v44 = vsel %vm1569_vm1, %v1324_v50, %v1554_v16  ;;  %v1572_v5 = vsel %vm1569_vm1, %v1325_v42, %v1555_v25  ;;  %v1573_v21 = vsel %vm1569_vm1, %v1326_v17, %v1556_v53 }
 0x209   :  { %v1586_v39 = vcombine.low %v1570_v27, %v1571_v44  ;;  %v1587_v30 = vcombine.low %v1572_v5, %v1573_v21  ;;  %v1619_v3 = vcombine.low %v1611_v57, %v1618_v47 }
 0x20b   :  { %v1594_v28 = vrot.slane %v1586_v39, %v3075_v13  ;;  %v1601_v49 = vrot.slane %v1587_v30, %v3075_v13  ;;  %1623 = vst [vmem:[#allocation2 + $0x8] sm:$0xff] %v1619_v3 }
 0x20d   :  { %v1602_v0 = vcombine.low %v1594_v28, %v1601_v49 }
 0x20f   :  { %1622 = vst [vmem:[#allocation2] sm:$0xff] %v1602_v0 }
 0x210   :  { %1697 = shalt.err (!%p1694_p4)
}
 0x211   :  { %1633 = dma.vmem_to_hbm [thread:$0]  %s1631_s27, 256, %s2938_s7, [#allocation3]  }
 0x212   :  { %1706 = dma.done.wait [#allocation3], 256  }
 0x213   :  { %1707 = vsyncadd [#allocation3], 4294967040 }
 0x214   :  { %1637 = vsyncpa [#allocation3], 1 }

</bundles_post_ra>
